<compile_context>
chip_gen: v5e
topology: v5e:2x2
jax: 0.10.0
libtpu: 0.0.40
codegen_flags: <defaults>
</compile_context>

<pallas_src>
import functools
import math

import jax
import jax.numpy as jnp
from jax.experimental import pallas as pl
from jax.experimental.pallas import tpu as pltpu

LANE = 128      # vreg lane width: pad feature/channel dims to multiples of this
SUBLANE = 8


def _round_up(x, m):
    return ((x + m - 1) // m) * m


def _pad2d(x, rows, cols):
    r, c = x.shape
    return jnp.pad(x, ((0, rows - r), (0, cols - c)))


# ------------------------------ glue (JAX) --------------------------------- #

def build_normalized_adj(edge_index, num_nodes):
    """Dense A_hat = D^-1/2 (A + I) D^-1/2 from a [2, E] edge_index."""
    src, dst = edge_index[0], edge_index[1]
    a = jnp.zeros((num_nodes, num_nodes), jnp.float32)
    a = a.at[dst, src].set(1.0)                     # messages flow src -> dst
    a = a + jnp.eye(num_nodes, dtype=jnp.float32)   # self-loops
    deg = a.sum(axis=1)
    d_inv_sqrt = jnp.where(deg > 0, 1.0 / jnp.sqrt(deg), 0.0)
    return a * d_inv_sqrt[:, None] * d_inv_sqrt[None, :]


def _pad_params(params, operand_dtype):
    """Zero-pad all channel dims to multiples of 128 (lane-dense tiles)."""
    in_ch = params["convs"][0][0].shape[0]
    hidden = params["convs"][0][0].shape[1]
    out_ch = params["lin"][0].shape[1]
    P = _round_up(max(in_ch, hidden), LANE)    # feature width used everywhere
    OP = _round_up(out_ch, LANE)               # final output width
    wc = jnp.stack([_pad2d(w, P, P) for (w, _) in params["convs"]])   # [L,P,P]
    bc = jnp.stack([_pad2d(b, 1, P) for (_, b) in params["convs"]])   # [L,1,P]
    w_lin, b_lin = params["lin"]
    wl = _pad2d(w_lin, P, OP)
    bl = _pad2d(b_lin, 1, OP)
    # Matmul operands in operand_dtype (bf16 recommended on v6e/v7x); biases
    # and accumulation stay f32.
    return (wc.astype(operand_dtype), bc.astype(jnp.float32),
            wl.astype(operand_dtype), bl.astype(jnp.float32), P, OP)


def _compiler_params(dimension_semantics, vmem_limit_bytes=None):
    kwargs = dict(dimension_semantics=dimension_semantics)
    if vmem_limit_bytes is not None:
        kwargs["vmem_limit_bytes"] = vmem_limit_bytes
    return pltpu.CompilerParams(**kwargs)


# --------------------- Path 1: fully-fused small-graph kernel -------------- #

def _fused_gnn_kernel(x_ref, a_ref, wc_ref, bc_ref, wl_ref, bl_ref, o_ref, *,
                      num_layers):
    """Entire forward in one kernel; everything stays in VMEM/vregs."""
    cd = x_ref.dtype                 # MXU operand dtype (f32 or bf16)
    a = a_ref[...]
    h = x_ref[...]
    for i in range(num_layers):      # static unroll over layers
        z = jnp.dot(h, wc_ref[i], preferred_element_type=jnp.float32)
        agg = jnp.dot(a, z.astype(cd), preferred_element_type=jnp.float32)
        h = jnp.maximum(agg + bc_ref[i], 0.0).astype(cd)
    out = jnp.dot(h, wl_ref[...], preferred_element_type=jnp.float32)
    o_ref[...] = (out + bl_ref[...]).astype(o_ref.dtype)


def basic_gnn_forward_fused(x, edge_index, params, *, num_nodes,
                            operand_dtype=jnp.float32):
    """Single pallas_call forward. Use when padded working set fits in VMEM."""
    wc, bc, wl, bl, P, OP = _pad_params(params, operand_dtype)
    num_layers = wc.shape[0]
    out_ch = params["lin"][0].shape[1]

    Np = _round_up(num_nodes, LANE)            # lane axis of A_hat
    a_hat = build_normalized_adj(edge_index, num_nodes)
    a_pad = _pad2d(a_hat, Np, Np).astype(operand_dtype)
    x_pad = _pad2d(x, Np, P).astype(operand_dtype)

    kernel = functools.partial(_fused_gnn_kernel, num_layers=num_layers)
    out_pad = pl.pallas_call(
        kernel,
        out_shape=jax.ShapeDtypeStruct((Np, OP), jnp.float32),
    )(x_pad, a_pad, wc, bc, wl, bl)
    return out_pad[:num_nodes, :out_ch]


# ---------------- Path 2: tiled large-graph kernels (K-tiled agg) ---------- #

def _gcn_layer_tiled_kernel(a_ref, x_ref, w_ref, b_ref, o_ref, acc_ref):
    # grid = (row tiles "parallel", K tiles over nodes "arbitrary")
    k = pl.program_id(1)

    @pl.when(k == 0)
    def _():
        acc_ref[...] = jnp.zeros_like(acc_ref)

    # h_k = X[k-tile] @ W, produced on the fly (never hits HBM). Recomputed per
    # row tile — negligible FLOPs vs A_hat @ h for large graphs.
    h_k = jnp.dot(x_ref[...], w_ref[...], preferred_element_type=jnp.float32)
    acc_ref[...] += jnp.dot(a_ref[...], h_k.astype(a_ref.dtype),
                            preferred_element_type=jnp.float32)

    @pl.when(k == pl.num_programs(1) - 1)
    def _():
        o_ref[...] = jnp.maximum(acc_ref[...] + b_ref[...],
                                 0.0).astype(o_ref.dtype)


def _gcn_layer_tiled(a_pad, x_pad, w, b, *, tm, tk, vmem_limit_bytes=None):
    Np, P = x_pad.shape
    assert a_pad.shape == (Np, Np)
    grid = (Np // tm, Np // tk)
    return pl.pallas_call(
        _gcn_layer_tiled_kernel,
        out_shape=jax.ShapeDtypeStruct((Np, P), x_pad.dtype),
        grid_spec=pltpu.PrefetchScalarGridSpec(
            num_scalar_prefetch=0,
            grid=grid,
            in_specs=[
                pl.BlockSpec((tm, tk), lambda i, k: (i, k)),   # A_hat tile
                pl.BlockSpec((tk, P), lambda i, k: (k, 0)),    # X rows for k
                pl.BlockSpec((P, P), lambda i, k: (0, 0)),     # W (resident)
                pl.BlockSpec((1, P), lambda i, k: (0, 0)),     # bias (resident)
            ],
            out_specs=pl.BlockSpec((tm, P), lambda i, k: (i, 0)),
            scratch_shapes=[pltpu.VMEM((tm, P), jnp.float32)],
        ),
        compiler_params=_compiler_params(("parallel", "arbitrary"),
                                         vmem_limit_bytes),
    )(a_pad, x_pad, w, b)


def _linear_tiled_kernel(x_ref, w_ref, b_ref, o_ref):
    acc = jnp.dot(x_ref[...], w_ref[...], preferred_element_type=jnp.float32)
    o_ref[...] = (acc + b_ref[...]).astype(o_ref.dtype)


def _linear_tiled(x_pad, w, b, *, tm, vmem_limit_bytes=None):
    Np, P = x_pad.shape
    OP = w.shape[1]
    return pl.pallas_call(
        _linear_tiled_kernel,
        out_shape=jax.ShapeDtypeStruct((Np, OP), jnp.float32),
        grid_spec=pltpu.PrefetchScalarGridSpec(
            num_scalar_prefetch=0,
            grid=(Np // tm,),
            in_specs=[
                pl.BlockSpec((tm, P), lambda i: (i, 0)),
                pl.BlockSpec((P, OP), lambda i: (0, 0)),
                pl.BlockSpec((1, OP), lambda i: (0, 0)),
            ],
            out_specs=pl.BlockSpec((tm, OP), lambda i: (i, 0)),
        ),
        compiler_params=_compiler_params(("parallel",), vmem_limit_bytes),
    )(x_pad, w, b)


def basic_gnn_forward_tiled(x, edge_index, params, *, num_nodes,
                            operand_dtype=jnp.bfloat16, tm=128, tk=128,
                            vmem_limit_bytes=None):
    """Tiled path for graphs too large for the fused kernel.

    Tile sizes must be re-derived per generation (v7x: 64 MiB physical VMEM,
    2 TCs — tm=256 recommended; v5e/v6e: 128-aligned tiles suffice).
    """
    assert tm % SUBLANE == 0 and tk % LANE == 0
    wc, bc, wl, bl, P, OP = _pad_params(params, operand_dtype)
    num_layers = wc.shape[0]
    out_ch = params["lin"][0].shape[1]

    Np = _round_up(num_nodes, math.lcm(tm, tk))
    a_hat = build_normalized_adj(edge_index, num_nodes)
    a_pad = _pad2d(a_hat, Np, Np).astype(operand_dtype)
    h = _pad2d(x, Np, P).astype(operand_dtype)

    for i in range(num_layers):
        h = _gcn_layer_tiled(a_pad, h, wc[i], bc[i], tm=tm, tk=tk,
                             vmem_limit_bytes=vmem_limit_bytes)
    out_pad = _linear_tiled(h, wl, bl, tm=tm,
                            vmem_limit_bytes=vmem_limit_bytes)
    return out_pad[:num_nodes, :out_ch]


# ------------------------------ params / reference ------------------------- #

def init_params(key, in_channels, hidden_channels, num_layers, out_channels):
    params = {"convs": [], "lin": None}
    fan_in = in_channels
    for _ in range(num_layers):
        key, kw, kb = jax.random.split(key, 3)
        scale = 1.0 / jnp.sqrt(jnp.float32(fan_in))
        w = jax.random.uniform(kw, (fan_in, hidden_channels),
                               minval=-scale, maxval=scale, dtype=jnp.float32)
        b = jax.random.uniform(kb, (1, hidden_channels),
                               minval=-scale, maxval=scale, dtype=jnp.float32)
        params["convs"].append((w, b))
        fan_in = hidden_channels
    key, kw, kb = jax.random.split(key, 3)
    scale = 1.0 / jnp.sqrt(jnp.float32(hidden_channels))
    w_lin = jax.random.uniform(kw, (hidden_channels, out_channels),
                               minval=-scale, maxval=scale, dtype=jnp.float32)
    b_lin = jax.random.uniform(kb, (1, out_channels),
                               minval=-scale, maxval=scale, dtype=jnp.float32)
    params["lin"] = (w_lin, b_lin)
    return params


def _reference_forward(x, a_hat, params, dtype):
    """Pure-JAX reference mirroring the kernel's operand dtype / f32 accum."""
    h = x.astype(dtype)
    a = a_hat.astype(dtype)
    for (w, b) in params["convs"]:
        z = jnp.dot(h, w.astype(dtype), preferred_element_type=jnp.float32)
        h = jnp.maximum(jnp.dot(a, z.astype(dtype),
                                preferred_element_type=jnp.float32) + b, 0.0)
        h = h.astype(dtype)
    w_lin, b_lin = params["lin"]
    return jnp.dot(h, w_lin.astype(dtype),
                   preferred_element_type=jnp.float32) + b_lin


# --------------------------------- main ------------------------------------ #

if __name__ == "__main__":
    N = 200            # deliberately NOT a multiple of 128 -> exercises padding
    E = 800
    IN_CH = 16
    HIDDEN = 32
    NUM_LAYERS = 2
    OUT_CH = 8

    key = jax.random.PRNGKey(0)
    key, kx, ke_src, ke_dst, kp = jax.random.split(key, 5)

    x = jax.random.normal(kx, (N, IN_CH), dtype=jnp.float32)
    src = jax.random.randint(ke_src, (E,), 0, N, dtype=jnp.int32)
    dst = jax.random.randint(ke_dst, (E,), 0, N, dtype=jnp.int32)
    edge_index = jnp.stack([src, dst], axis=0)          # [2, E]

    params = init_params(kp, IN_CH, HIDDEN, NUM_LAYERS, OUT_CH)
    a_hat = build_normalized_adj(edge_index, N)

    # Path 1: fully-fused single-kernel forward (f32 for a strict check).
    out_fused = basic_gnn_forward_fused(x, edge_index, params, num_nodes=N,
                                        operand_dtype=jnp.float32)
    out_fused = jax.block_until_ready(out_fused)
    assert out_fused.shape == (N, OUT_CH), out_fused.shape
    ref32 = _reference_forward(x, a_hat, params, jnp.float32)
    assert jnp.allclose(out_fused, ref32, atol=5e-4, rtol=5e-4), \
        float(jnp.max(jnp.abs(out_fused - ref32)))

    # Path 2: tiled large-graph path (per-layer fused kernel, K-tiled
    # accumulation, bf16 MXU operands with f32 accumulation).
    out_tiled = basic_gnn_forward_tiled(x, edge_index, params, num_nodes=N,
                                        operand_dtype=jnp.bfloat16,
                                        tm=128, tk=128)
    out_tiled = jax.block_until_ready(out_tiled)
    assert out_tiled.shape == (N, OUT_CH), out_tiled.shape
    ref_bf16 = _reference_forward(x, a_hat, params, jnp.bfloat16)
    assert jnp.allclose(out_tiled, ref_bf16, atol=2e-2, rtol=2e-2), \
        float(jnp.max(jnp.abs(out_tiled - ref_bf16)))

    print("KERNEL_OK")
</pallas_src>

<mosaic_0001>
module attributes {stable_mosaic.version = 11 : i64} {
  func.func @_fused_gnn_kernel(%arg0: memref<256x128xf32, #tpu.memory_space<vmem>>, %arg1: memref<256x256xf32, #tpu.memory_space<vmem>>, %arg2: memref<2x128x128xf32, #tpu.memory_space<vmem>>, %arg3: memref<2x1x128xf32, #tpu.memory_space<vmem>>, %arg4: memref<128x128xf32, #tpu.memory_space<vmem>>, %arg5: memref<1x128xf32, #tpu.memory_space<vmem>>, %arg6: memref<256x128xf32, #tpu.memory_space<vmem>>) attributes {dimension_semantics = [], scalar_prefetch = 0 : i64, scratch_operands = 0 : i64, tpu.core_type = #tpu.core_type<tc>} {
    %c0 = arith.constant 0 : index
    %c0_0 = arith.constant 0 : index
    %0 = vector.load %arg1[%c0, %c0_0] : memref<256x256xf32, #tpu.memory_space<vmem>>, vector<256x256xf32>
    %c0_1 = arith.constant 0 : index
    %c0_2 = arith.constant 0 : index
    %1 = vector.load %arg0[%c0_1, %c0_2] : memref<256x128xf32, #tpu.memory_space<vmem>>, vector<256x128xf32>
    %c0_3 = arith.constant 0 : index
    %c0_4 = arith.constant 0 : index
    %c0_5 = arith.constant 0 : index
    %2 = vector.load %arg2[%c0_3, %c0_4, %c0_5] : memref<2x128x128xf32, #tpu.memory_space<vmem>>, vector<1x128x128xf32>
    %3 = vector.shape_cast %2 : vector<1x128x128xf32> to vector<128x128xf32>
    %cst = arith.constant dense<0.000000e+00> : vector<256x128xf32>
    %4 = tpu.matmul %1, %3, %cst {dimension_numbers = #tpu.dot_dimension_numbers<[1], [0], [0], [1], [0, 0, 1, 1], [], []>} : vector<256x128xf32>, vector<128x128xf32>, vector<256x128xf32> -> vector<256x128xf32>
    %cst_6 = arith.constant dense<0.000000e+00> : vector<256x128xf32>
    %5 = tpu.matmul %0, %4, %cst_6 {dimension_numbers = #tpu.dot_dimension_numbers<[1], [0], [0], [1], [0, 0, 1, 1], [], []>} : vector<256x256xf32>, vector<256x128xf32>, vector<256x128xf32> -> vector<256x128xf32>
    %c0_7 = arith.constant 0 : index
    %c0_8 = arith.constant 0 : index
    %c0_9 = arith.constant 0 : index
    %6 = vector.load %arg3[%c0_7, %c0_8, %c0_9] : memref<2x1x128xf32, #tpu.memory_space<vmem>>, vector<1x1x128xf32>
    %7 = vector.shape_cast %6 : vector<1x1x128xf32> to vector<1x128xf32>
    %8 = vector.broadcast %7 : vector<1x128xf32> to vector<256x128xf32>
    %9 = arith.addf %5, %8 : vector<256x128xf32>
    %cst_10 = arith.constant 0.000000e+00 : f32
    %10 = vector.broadcast %cst_10 : f32 to vector<256x128xf32>
    %11 = arith.maximumf %9, %10 : vector<256x128xf32>
    %c1 = arith.constant 1 : index
    %c0_11 = arith.constant 0 : index
    %c0_12 = arith.constant 0 : index
    %12 = vector.load %arg2[%c1, %c0_11, %c0_12] : memref<2x128x128xf32, #tpu.memory_space<vmem>>, vector<1x128x128xf32>
    %13 = vector.shape_cast %12 : vector<1x128x128xf32> to vector<128x128xf32>
    %cst_13 = arith.constant dense<0.000000e+00> : vector<256x128xf32>
    %14 = tpu.matmul %11, %13, %cst_13 {dimension_numbers = #tpu.dot_dimension_numbers<[1], [0], [0], [1], [0, 0, 1, 1], [], []>} : vector<256x128xf32>, vector<128x128xf32>, vector<256x128xf32> -> vector<256x128xf32>
    %cst_14 = arith.constant dense<0.000000e+00> : vector<256x128xf32>
    %15 = tpu.matmul %0, %14, %cst_14 {dimension_numbers = #tpu.dot_dimension_numbers<[1], [0], [0], [1], [0, 0, 1, 1], [], []>} : vector<256x256xf32>, vector<256x128xf32>, vector<256x128xf32> -> vector<256x128xf32>
    %c1_15 = arith.constant 1 : index
    %c0_16 = arith.constant 0 : index
    %c0_17 = arith.constant 0 : index
    %16 = vector.load %arg3[%c1_15, %c0_16, %c0_17] : memref<2x1x128xf32, #tpu.memory_space<vmem>>, vector<1x1x128xf32>
    %17 = vector.shape_cast %16 : vector<1x1x128xf32> to vector<1x128xf32>
    %18 = vector.broadcast %17 : vector<1x128xf32> to vector<256x128xf32>
    %19 = arith.addf %15, %18 : vector<256x128xf32>
    %cst_18 = arith.constant 0.000000e+00 : f32
    %20 = vector.broadcast %cst_18 : f32 to vector<256x128xf32>
    %21 = arith.maximumf %19, %20 : vector<256x128xf32>
    %c0_19 = arith.constant 0 : index
    %c0_20 = arith.constant 0 : index
    %22 = vector.load %arg4[%c0_19, %c0_20] : memref<128x128xf32, #tpu.memory_space<vmem>>, vector<128x128xf32>
    %cst_21 = arith.constant dense<0.000000e+00> : vector<256x128xf32>
    %23 = tpu.matmul %21, %22, %cst_21 {dimension_numbers = #tpu.dot_dimension_numbers<[1], [0], [0], [1], [0, 0, 1, 1], [], []>} : vector<256x128xf32>, vector<128x128xf32>, vector<256x128xf32> -> vector<256x128xf32>
    %c0_22 = arith.constant 0 : index
    %c0_23 = arith.constant 0 : index
    %24 = vector.load %arg5[%c0_22, %c0_23] : memref<1x128xf32, #tpu.memory_space<vmem>>, vector<1x128xf32>
    %25 = vector.broadcast %24 : vector<1x128xf32> to vector<256x128xf32>
    %26 = arith.addf %23, %25 : vector<256x128xf32>
    %c0_24 = arith.constant 0 : index
    %c0_25 = arith.constant 0 : index
    %27 = vector.load %arg6[%c0_24, %c0_25] : memref<256x128xf32, #tpu.memory_space<vmem>>, vector<256x128xf32>
    tpu.vector_store %arg6[%c0_24, %c0_25], %26 {strides = array<i32>} : memref<256x128xf32, #tpu.memory_space<vmem>>, vector<256x128xf32>,
    return
  }
}

</mosaic_0001>

<bundles_post_ra>
// kernel: tpu_custom_call.1
= control target key start
LH: loop header
LB: loop body
LE: loop exit
PB: predicated region body
PF: predicated region fallthrough
CT: control target
= control target key end

     0   :  { %11 = vsyncpa [#allocation3], 0  ;;  %s1866_s0 = inlined_call_operand.hbm [shape: f32[256,128], index: 0, kind: input, shape index: {}]   ;;  %s1867_s1 = inlined_call_operand.hbm [shape: f32[256,256], index: 1, kind: input, shape index: {}]   ;;  %s1868_s2 = inlined_call_operand.hbm [shape: f32[2,128,128], index: 2, kind: input, shape index: {}]   ;;  %s1869_s3 = inlined_call_operand.vmem [shape: f32[2,1,128], index: 3, kind: input, shape index: {}]   ;;  %s1870_s4 = inlined_call_operand.hbm [shape: f32[128,128], index: 4, kind: input, shape index: {}]   ;;  %s1871_s5 = inlined_call_operand.vmem [shape: f32[1,128], index: 5, kind: input, shape index: {}]   ;;  %s1872_s6 = inlined_call_operand.hbm [shape: f32[256,128], index: 6, kind: output, shape index: {}]  }
   0x1   :  { %12 = vsyncpa [#allocation6], 0 }
   0x2   :  { %13 = vsyncpa [#allocation9], 0  ;;  %s32_s23 = sshll.u32 %s1867_s1, 4  ;;  %s33_s23 = int_to_ptr.hbm [resolvable:$true] %s32_s23 }
   0x3   :  { %14 = vsyncpa [#allocation4], 0  ;;  %s1352_s24 = smov [#allocation5]   ;;  %s19_s28 = sshll.u32 %s1866_s0, 4  ;;  %s20_s28 = int_to_ptr.hbm [resolvable:$true] %s19_s28 }
   0x4   :  { %s34_s25 = sshll.u32 %s1352_s24, 4  ;;  %s1353_s29 = smov 256   ;;  %s35_s25 = int_to_ptr.vmem [resolvable:$true] %s34_s25 }
   0x5   :  { %s1354_s30 = smov 16   ;;  %s1355_s7 = smov [#allocation2]  }
   0x6   :  { %40 = dma.hbm_to_vmem [thread:$0]  %s33_s23, 8192, %s35_s25, [#allocation6], %s1353_s29, %s1353_s29, %s1354_s30  }
   0x7   :  { %s21_s8 = sshll.u32 %s1355_s7, 4  ;;  %s1356_s9 = smov 128   ;;  %s22_s8 = int_to_ptr.vmem [resolvable:$true] %s21_s8 }
   0x8   :  { %s1357_s10 = smov 8   ;;  %s45_s12 = sshll.u32 %s1868_s2, 4  ;;  %s46_s12 = int_to_ptr.hbm [resolvable:$true] %s45_s12 }
   0x9   :  { %27 = dma.hbm_to_vmem [thread:$0]  %s20_s28, 4096, %s22_s8, [#allocation3], %s1356_s9, %s1356_s9, %s1357_s10  }
   0xa   :  { %s1358_s13 = smov [#allocation7]   ;;  %s60_s16 = sshll.u32 %s1870_s4, 4  ;;  %s61_s16 = int_to_ptr.hbm [resolvable:$true] %s60_s16 }
   0xb   :  { %s47_s0 = sshll.u32 %s1358_s13, 4  ;;  %s1359_s17 = smov [#allocation8]   ;;  %s48_s0 = int_to_ptr.vmem [resolvable:$true] %s47_s0 }
   0xc   :  { %53 = dma.hbm_to_vmem [thread:$0]  %s46_s12, 4096, %s48_s0, [#allocation6], %s1356_s9, %s1356_s9, %s1357_s10  }
   0xd   :  { %s62_s18 = sshll.u32 %s1359_s17, 4  ;;  %s63_s18 = int_to_ptr.vmem [resolvable:$true] %s62_s18 }
   0xe   :  { %68 = dma.hbm_to_vmem [thread:$0]  %s61_s16, 2048, %s63_s18, [#allocation9], %s1356_s9, %s1356_s9, %s1357_s10  }
   0xf   :  { %1344 = dma.done.wait [#allocation3], 4096  }
  0x10   :  { %1345 = vsyncadd [#allocation3], 4294963200 }
  0x11   :  { %1346 = dma.done.wait [#allocation6], 12288  }
  0x12   :  { %1347 = vsyncadd [#allocation6], 4294955008 }
  0x13   :  { %1348 = dma.done.wait [#allocation9], 2048  }
  0x14   :  { %1349 = vsyncadd [#allocation9], 4294965248  ;;  %v198_v0 = vld [vmem:[#allocation7 + $0x78] sm:$0xff]  ;;  %v197_v1 = vld [vmem:[#allocation7 + $0x70] sm:$0xff]  ;;  %s1138_s25 = sshll.u32 %s1872_s6, 4  ;;  %s1139_s25 = int_to_ptr.hbm [resolvable:$true] %s1138_s25 }
  0x15   :  { %199 = vmatpush.msra.mxu0 %v198_v0  ;;  %1154 = vmatpush.msra.mxu3 %v198_v0  ;;  %v196_v2 = vld [vmem:[#allocation7 + $0x68] sm:$0xff]  ;;  %v195_v3 = vld [vmem:[#allocation7 + $0x60] sm:$0xff]  ;;  %v194_v4 = vld [vmem:[#allocation7 + $0x58] sm:$0xff] }
  0x16   :  { %v193_v5 = vld [vmem:[#allocation7 + $0x50] sm:$0xff]  ;;  %v192_v6 = vld [vmem:[#allocation7 + $0x48] sm:$0xff]  ;;  %v191_v7 = vld [vmem:[#allocation7 + $0x40] sm:$0xff] }
  0x17   :  { %200 = vmatpush.msra.mxu0 %v197_v1  ;;  %1155 = vmatpush.msra.mxu3 %v197_v1  ;;  %v190_v8 = vld [vmem:[#allocation7 + $0x38] sm:$0xff]  ;;  %v189_v9 = vld [vmem:[#allocation7 + $0x30] sm:$0xff]  ;;  %v188_v10 = vld [vmem:[#allocation7 + $0x28] sm:$0xff] }
  0x18   :  { %v187_v11 = vld [vmem:[#allocation7 + $0x20] sm:$0xff]  ;;  %v186_v12 = vld [vmem:[#allocation7 + $0x18] sm:$0xff]  ;;  %v185_v13 = vld [vmem:[#allocation7 + $0x10] sm:$0xff] }
  0x19   :  { %201 = vmatpush.msra.mxu0 %v196_v2  ;;  %1156 = vmatpush.msra.mxu3 %v196_v2  ;;  %v184_v14 = vld [vmem:[#allocation7 + $0x8] sm:$0xff]  ;;  %v183_v15 = vld [vmem:[#allocation7] sm:$0xff]  ;;  %v153_v20 = vld [vmem:[#allocation2 + $0x10] sm:$0xff] }
  0x1a   :  { %v151_v16 = vld [vmem:[#allocation2] sm:$0xff]  ;;  %v152_v18 = vld [vmem:[#allocation2 + $0x8] sm:$0xff]  ;;  %v177_v21 = vld [vmem:[#allocation2 + $0xd0] sm:$0xff] }
  0x1b   :  { %202 = vmatpush.msra.mxu0 %v195_v3  ;;  %1157 = vmatpush.msra.mxu3 %v195_v3  ;;  %v175_v17 = vld [vmem:[#allocation2 + $0xc0] sm:$0xff]  ;;  %v176_v19 = vld [vmem:[#allocation2 + $0xc8] sm:$0xff]  ;;  %v154_v22 = vld [vmem:[#allocation2 + $0x18] sm:$0xff] }
  0x1c   :  { %v178_v23 = vld [vmem:[#allocation2 + $0xd8] sm:$0xff]  ;;  %v155_v24 = vld [vmem:[#allocation2 + $0x20] sm:$0xff]  ;;  %v156_v26 = vld [vmem:[#allocation2 + $0x28] sm:$0xff] }
  0x1d   :  { %203 = vmatpush.msra.mxu0 %v194_v4  ;;  %1158 = vmatpush.msra.mxu3 %v194_v4  ;;  %v179_v25 = vld [vmem:[#allocation2 + $0xe0] sm:$0xff]  ;;  %v180_v27 = vld [vmem:[#allocation2 + $0xe8] sm:$0xff]  ;;  %v157_v28 = vld [vmem:[#allocation2 + $0x30] sm:$0xff] }
  0x1e   :  { %v181_v29 = vld [vmem:[#allocation2 + $0xf0] sm:$0xff]  ;;  %v158_v30 = vld [vmem:[#allocation2 + $0x38] sm:$0xff]  ;;  %v159_v32 = vld [vmem:[#allocation2 + $0x40] sm:$0xff] }
  0x1f   :  { %204 = vmatpush.msra.mxu0 %v193_v5  ;;  %1159 = vmatpush.msra.mxu3 %v193_v5  ;;  %v182_v31 = vld [vmem:[#allocation2 + $0xf8] sm:$0xff]  ;;  %v160_v33 = vld [vmem:[#allocation2 + $0x48] sm:$0xff]  ;;  %v161_v34 = vld [vmem:[#allocation2 + $0x50] sm:$0xff] }
  0x20   :  { %v162_v35 = vld [vmem:[#allocation2 + $0x58] sm:$0xff]  ;;  %v163_v36 = vld [vmem:[#allocation2 + $0x60] sm:$0xff]  ;;  %v164_v37 = vld [vmem:[#allocation2 + $0x68] sm:$0xff] }
  0x21   :  { %205 = vmatpush.msra.mxu0 %v192_v6  ;;  %1160 = vmatpush.msra.mxu3 %v192_v6  ;;  %v165_v38 = vld [vmem:[#allocation2 + $0x70] sm:$0xff]  ;;  %v166_v39 = vld [vmem:[#allocation2 + $0x78] sm:$0xff]  ;;  %v167_v41 = vld [vmem:[#allocation2 + $0x80] sm:$0xff] }
  0x22   :  { %v168_v43 = vld [vmem:[#allocation2 + $0x88] sm:$0xff]  ;;  %v169_v46 = vld [vmem:[#allocation2 + $0x90] sm:$0xff]  ;;  %v170_v49 = vld [vmem:[#allocation2 + $0x98] sm:$0xff] }
  0x23   :  { %206 = vmatpush.msra.mxu0 %v191_v7  ;;  %1161 = vmatpush.msra.mxu3 %v191_v7  ;;  %v171_v52 = vld [vmem:[#allocation2 + $0xa0] sm:$0xff]  ;;  %v172_v55 = vld [vmem:[#allocation2 + $0xa8] sm:$0xff]  ;;  %v173_v58 = vld [vmem:[#allocation2 + $0xb0] sm:$0xff] }
  0x24   :  { %v174_v61 = vld [vmem:[#allocation2 + $0xb8] sm:$0xff] }
  0x25   :  { %207 = vmatpush.msra.mxu0 %v190_v8  ;;  %1162 = vmatpush.msra.mxu3 %v190_v8 }
  0x27   :  { %208 = vmatpush.msra.mxu0 %v189_v9  ;;  %1163 = vmatpush.msra.mxu3 %v189_v9 }
  0x29   :  { %209 = vmatpush.msra.mxu0 %v188_v10  ;;  %1164 = vmatpush.msra.mxu3 %v188_v10 }
  0x2b   :  { %210 = vmatpush.msra.mxu0 %v187_v11  ;;  %1165 = vmatpush.msra.mxu3 %v187_v11  ;;  %v135_v11 = vld [vmem:[#allocation5 + $0x180] sm:$0xff] }
  0x2d   :  { %211 = vmatpush.msra.mxu0 %v186_v12  ;;  %1166 = vmatpush.msra.mxu3 %v186_v12 }
  0x2f   :  { %212 = vmatpush.msra.mxu0 %v185_v13  ;;  %1167 = vmatpush.msra.mxu3 %v185_v13  ;;  %v137_v13 = vld [vmem:[#allocation5 + $0x190] sm:$0xff] }
  0x31   :  { %213 = vmatpush.msra.mxu0 %v184_v14  ;;  %1168 = vmatpush.msra.mxu3 %v184_v14 }
  0x33   :  { %214 = vmatpush.msra.mxu0 %v183_v15  ;;  %1169 = vmatpush.msra.mxu3 %v183_v15  ;;  %v1456_v15 = vld [vmem:[#allocation5 + $0x1a0] sm:$0xff] }
  0x34   :  { %215 = vmatmul.f32.vlgmr.msra.gmra.mxu0 %v151_v16  ;;  %287 = vmatmul.f32.vlgmr.msra.gmra.mxu3 %v175_v17  ;;  %1901 = vst [vmem:[#allocation15_spill] sm:$0xff] %v1456_v15  ;;  %v1460_v17 = vld [vmem:[#allocation5] sm:$0xff] }
  0x3c   :  { %218 = vmatmul.f32.gmra.mxu0 %v152_v18  ;;  %290 = vmatmul.f32.gmra.mxu3 %v176_v19  ;;  %v1463_v18 = vld [vmem:[#allocation5 + $0x1b0] sm:$0xff] }
  0x3d   :  { %1902 = vst [vmem:[#allocation16_spill] sm:$0xff] %v1463_v18 }
  0x44   :  { %221 = vmatmul.f32.gmra.mxu0 %v153_v20  ;;  %293 = vmatmul.f32.gmra.mxu3 %v177_v21  ;;  %v1466_v20 = vld [vmem:[#allocation5 + $0x10] sm:$0xff]  ;;  %v1469_v21 = vld [vmem:[#allocation5 + $0x1c0] sm:$0xff] }
  0x45   :  { %1903 = vst [vmem:[#allocation17_spill] sm:$0xff] %v1469_v21 }
  0x4c   :  { %224 = vmatmul.f32.gmra.mxu0 %v154_v22  ;;  %296 = vmatmul.f32.gmra.mxu3 %v178_v23  ;;  %v1472_v23 = vld [vmem:[#allocation5 + $0x20] sm:$0xff] }
  0x54   :  { %227 = vmatmul.f32.gmra.mxu0 %v155_v24  ;;  %299 = vmatmul.f32.gmra.mxu3 %v179_v25  ;;  %v1475_v24 = vld [vmem:[#allocation5 + $0x1d0] sm:$0xff] }
  0x55   :  { %1904 = vst [vmem:[#allocation18_spill] sm:$0xff] %v1475_v24  ;;  %v1478_v25 = vld [vmem:[#allocation5 + $0x30] sm:$0xff] }
  0x5c   :  { %230 = vmatmul.f32.gmra.mxu0 %v156_v26  ;;  %302 = vmatmul.f32.gmra.mxu3 %v180_v27  ;;  %v1483_v26 = vld [vmem:[#allocation5 + $0x1e0] sm:$0xff]  ;;  %v1485_v27 = vld [vmem:[#allocation5 + $0x8] sm:$0xff] }
  0x5d   :  { %1905 = vst [vmem:[#allocation19_spill] sm:$0xff] %v1483_v26 }
  0x64   :  { %233 = vmatmul.f32.gmra.mxu0 %v157_v28  ;;  %305 = vmatmul.f32.gmra.mxu3 %v181_v29  ;;  %v1491_v28 = vld [vmem:[#allocation5 + $0x40] sm:$0xff]  ;;  %v1494_v29 = vld [vmem:[#allocation5 + $0x1f0] sm:$0xff] }
  0x65   :  { %1906 = vst [vmem:[#allocation20_spill] sm:$0xff] %v1494_v29 }
  0x6c   :  { %236 = vmatmul.f32.gmra.mxu0 %v158_v30  ;;  %308 = vmatmul.f32.gmra.mxu3 %v182_v31  ;;  %v1496_v30 = vld [vmem:[#allocation5 + $0x18] sm:$0xff]  ;;  %v1500_v31 = vld [vmem:[#allocation5 + $0x50] sm:$0xff] }
  0x74   :  { %239 = vmatmul.f32.gmra.mxu0 %v159_v32  ;;  %v1503_v32 = vld [vmem:[#allocation5 + $0x28] sm:$0xff] }
  0x7c   :  { %242 = vmatmul.f32.gmra.mxu0 %v160_v33  ;;  %v136_v33 = vld [vmem:[#allocation5 + $0x188] sm:$0xff] }
  0x84   :  { %245 = vmatmul.f32.gmra.mxu0 %v161_v34  ;;  %v1506_v34 = vld [vmem:[#allocation5 + $0x60] sm:$0xff] }
  0x8c   :  { %248 = vmatmul.f32.gmra.mxu0 %v162_v35  ;;  %v1509_v35 = vld [vmem:[#allocation5 + $0x38] sm:$0xff] }
  0x94   :  { %251 = vmatmul.f32.gmra.mxu0 %v163_v36  ;;  %v138_v36 = vld [vmem:[#allocation5 + $0x198] sm:$0xff] }
  0x9c   :  { %254 = vmatmul.f32.gmra.mxu0 %v164_v37  ;;  %v1512_v37 = vld [vmem:[#allocation5 + $0x70] sm:$0xff] }
  0xa4   :  { %257 = vmatmul.f32.gmra.mxu0 %v165_v38  ;;  %v1515_v38 = vld [vmem:[#allocation5 + $0x48] sm:$0xff] }
  0xac   :  { %260 = vmatmul.f32.gmra.mxu0 %v166_v39  ;;  %v140_v39 = vld [vmem:[#allocation5 + $0x1a8] sm:$0xff] }
  0xb1   :  { %v1417_v40 = vpop.f32.mrf.mxu0 }
  0xb4   :  { %263 = vmatmul.f32.gmra.mxu0 %v167_v41  ;;  %v1521_v41 = vld [vmem:[#allocation5 + $0x58] sm:$0xff] }
  0xb5   :  { %1907 = vst [vmem:[#allocation21_spill] sm:$0xff] %v1521_v41 }
  0xb7   :  { %v1421_v44 = vpop.f32.mrf.mxu3 }
  0xb9   :  { %v1419_v42 = vpop.f32.mrf.mxu0 }
  0xbc   :  { %266 = vmatmul.f32.gmra.mxu0 %v168_v43  ;;  %v1524_v43 = vld [vmem:[#allocation5 + $0x90] sm:$0xff] }
  0xbf   :  { %v1425_v47 = vpop.f32.mrf.mxu3 }
  0xc1   :  { %v1423_v45 = vpop.f32.mrf.mxu0 }
  0xc4   :  { %269 = vmatmul.f32.gmra.mxu0 %v169_v46  ;;  %v1530_v46 = vld [vmem:[#allocation5 + $0xa0] sm:$0xff] }
  0xc7   :  { %v1429_v50 = vpop.f32.mrf.mxu3 }
  0xc9   :  { %v1427_v48 = vpop.f32.mrf.mxu0 }
  0xcc   :  { %272 = vmatmul.f32.gmra.mxu0 %v170_v49  ;;  %v1536_v49 = vld [vmem:[#allocation5 + $0xb0] sm:$0xff] }
  0xcf   :  { %v1431_v53 = vpop.f32.mrf.mxu3 }
  0xd1   :  { %v228_v51 = vpop.f32.mrf.mxu0 }
  0xd4   :  { %275 = vmatmul.f32.gmra.mxu0 %v171_v52  ;;  %v1542_v52 = vld [vmem:[#allocation5 + $0xc0] sm:$0xff] }
  0xd7   :  { %v1433_v56 = vpop.f32.mrf.mxu3 }
  0xd9   :  { %v231_v54 = vpop.f32.mrf.mxu0 }
  0xdc   :  { %278 = vmatmul.f32.gmra.mxu0 %v172_v55  ;;  %v590_v55 = vld [vmem:[#allocation7 + $0xf8] sm:$0xff] }
  0xdf   :  { %v303_v59 = vpop.f32.mrf.mxu3 }
  0xe1   :  { %v234_v57 = vpop.f32.mrf.mxu0 }
  0xe4   :  { %281 = vmatmul.f32.gmra.mxu0 %v173_v58  ;;  %v588_v58 = vld [vmem:[#allocation7 + $0xe8] sm:$0xff] }
  0xe7   :  { %v306_v62 = vpop.f32.mrf.mxu3 }
  0xe9   :  { %v237_v60 = vpop.f32.mrf.mxu0 }
  0xec   :  { %284 = vmatmul.f32.gmra.mxu0 %v174_v61  ;;  %v586_v61 = vld [vmem:[#allocation7 + $0xd8] sm:$0xff] }
  0xef   :  { %v309_v0 = vpop.f32.mrf.mxu3 }
  0xf0   :  { %429 = vmatpush.msra.mxu2 %v309_v0 }
  0xf1   :  { %v240_v63 = vpop.f32.mrf.mxu0 }
  0xf2   :  { %430 = vmatpush.msra.mxu2 %v306_v62 }
  0xf4   :  { %431 = vmatpush.msra.mxu2 %v303_v59 }
  0xf6   :  { %432 = vmatpush.msra.mxu2 %v1433_v56 }
  0xf8   :  { %433 = vmatpush.msra.mxu2 %v1431_v53 }
  0xf9   :  { %v243_v1 = vpop.f32.mrf.mxu0 }
  0xfa   :  { %434 = vmatpush.msra.mxu2 %v1429_v50 }
  0xfc   :  { %435 = vmatpush.msra.mxu2 %v1425_v47 }
  0xfe   :  { %436 = vmatpush.msra.mxu2 %v1421_v44 }
 0x101   :  { %v246_v2 = vpop.f32.mrf.mxu0 }
 0x109   :  { %v249_v3 = vpop.f32.mrf.mxu0 }
 0x111   :  { %v252_v4 = vpop.f32.mrf.mxu0 }
 0x119   :  { %v255_v5 = vpop.f32.mrf.mxu0 }
 0x121   :  { %v258_v6 = vpop.f32.mrf.mxu0 }
 0x129   :  { %v261_v7 = vpop.f32.mrf.mxu0 }
 0x12a   :  { %316 = vmatpush.msra.mxu1 %v261_v7  ;;  %1170 = vmatpush.msrb.mxu3 %v261_v7  ;;  %v1562_v7 = vld [vmem:[#allocation5 + $0xc8] sm:$0xff] }
 0x12b   :  { %1914 = vst [vmem:[#allocation28_spill] sm:$0xff] %v1562_v7 }
 0x12c   :  { %317 = vmatpush.msra.mxu1 %v258_v6  ;;  %1171 = vmatpush.msrb.mxu3 %v258_v6  ;;  %v580_v6 = vld [vmem:[#allocation7 + $0xa8] sm:$0xff] }
 0x12e   :  { %318 = vmatpush.msra.mxu1 %v255_v5  ;;  %1172 = vmatpush.msrb.mxu3 %v255_v5  ;;  %v1560_v5 = vld [vmem:[#allocation5 + $0xf0] sm:$0xff] }
 0x130   :  { %319 = vmatpush.msra.mxu1 %v252_v4  ;;  %1173 = vmatpush.msrb.mxu3 %v252_v4  ;;  %v581_v4 = vld [vmem:[#allocation7 + $0xb0] sm:$0xff] }
 0x131   :  { %v1440_v8 = vpop.f32.mrf.mxu0 }
 0x132   :  { %320 = vmatpush.msra.mxu1 %v249_v3  ;;  %1174 = vmatpush.msrb.mxu3 %v249_v3  ;;  %v582_v3 = vld [vmem:[#allocation7 + $0xb8] sm:$0xff] }
 0x134   :  { %321 = vmatpush.msra.mxu1 %v246_v2  ;;  %1175 = vmatpush.msrb.mxu3 %v246_v2  ;;  %v583_v2 = vld [vmem:[#allocation7 + $0xc0] sm:$0xff] }
 0x136   :  { %322 = vmatpush.msra.mxu1 %v243_v1  ;;  %1176 = vmatpush.msrb.mxu3 %v243_v1  ;;  %v1556_v1 = vld [vmem:[#allocation5 + $0xb8] sm:$0xff] }
 0x137   :  { %1913 = vst [vmem:[#allocation27_spill] sm:$0xff] %v1556_v1 }
 0x138   :  { %323 = vmatpush.msra.mxu1 %v240_v63  ;;  %1177 = vmatpush.msrb.mxu3 %v240_v63  ;;  %v1554_v63 = vld [vmem:[#allocation5 + $0xe0] sm:$0xff] }
 0x139   :  { %v1442_v9 = vpop.f32.mrf.mxu0 }
 0x13a   :  { %324 = vmatpush.msra.mxu1 %v237_v60  ;;  %1178 = vmatpush.msrb.mxu3 %v237_v60  ;;  %v587_v60 = vld [vmem:[#allocation7 + $0xe0] sm:$0xff] }
 0x13c   :  { %325 = vmatpush.msra.mxu1 %v234_v57  ;;  %1179 = vmatpush.msrb.mxu3 %v234_v57  ;;  %v1548_v57 = vld [vmem:[#allocation5 + $0xd0] sm:$0xff] }
 0x13e   :  { %326 = vmatpush.msra.mxu1 %v231_v54  ;;  %1180 = vmatpush.msrb.mxu3 %v231_v54  ;;  %v150_v54 = vld [vmem:[#allocation5 + $0x1f8] sm:$0xff] }
 0x140   :  { %327 = vmatpush.msra.mxu1 %v228_v51  ;;  %1181 = vmatpush.msrb.mxu3 %v228_v51  ;;  %v148_v51 = vld [vmem:[#allocation5 + $0x1e8] sm:$0xff] }
 0x141   :  { %v270_v10 = vpop.f32.mrf.mxu0 }
 0x142   :  { %328 = vmatpush.msra.mxu1 %v1427_v48  ;;  %1182 = vmatpush.msrb.mxu3 %v1427_v48  ;;  %v146_v48 = vld [vmem:[#allocation5 + $0x1d8] sm:$0xff] }
 0x144   :  { %329 = vmatpush.msra.mxu1 %v1423_v45  ;;  %1183 = vmatpush.msrb.mxu3 %v1423_v45  ;;  %v144_v45 = vld [vmem:[#allocation5 + $0x1c8] sm:$0xff] }
 0x146   :  { %330 = vmatpush.msra.mxu1 %v1419_v42  ;;  %1184 = vmatpush.msrb.mxu3 %v1419_v42  ;;  %v142_v42 = vld [vmem:[#allocation5 + $0x1b8] sm:$0xff] }
 0x148   :  { %331 = vmatpush.msra.mxu1 %v1417_v40  ;;  %1185 = vmatpush.msrb.mxu3 %v1417_v40  ;;  %v1518_v40 = vld [vmem:[#allocation5 + $0x80] sm:$0xff] }
 0x149   :  { %v273_v12 = vpop.f32.mrf.mxu0  ;;  %404 = vmatmul.f32.vlgmr.msrb.gmra.mxu3 %v135_v11  ;;  %332 = vmatmul.f32.vlgmr.msra.gmra.mxu1 %v1460_v17  ;;  %v577_v11 = vld [vmem:[#allocation7 + $0x90] sm:$0xff] }
 0x14a   :  { %1186 = vmatpush.msra.mxu3 %v309_v0  ;;  %v584_v0 = vld [vmem:[#allocation7 + $0xc8] sm:$0xff] }
 0x14c   :  { %1187 = vmatpush.msra.mxu3 %v306_v62  ;;  %v585_v62 = vld [vmem:[#allocation7 + $0xd0] sm:$0xff] }
 0x14e   :  { %1188 = vmatpush.msra.mxu3 %v303_v59  ;;  %v1550_v59 = vld [vmem:[#allocation5 + $0xa8] sm:$0xff] }
 0x14f   :  { %1912 = vst [vmem:[#allocation26_spill] sm:$0xff] %v1550_v59 }
 0x150   :  { %1189 = vmatpush.msra.mxu3 %v1433_v56  ;;  %v589_v56 = vld [vmem:[#allocation7 + $0xf0] sm:$0xff] }
 0x151   :  { %v276_v14 = vpop.f32.mrf.mxu0  ;;  %407 = vmatmul.f32.gmra.mxu3 %v137_v13  ;;  %335 = vmatmul.f32.gmra.mxu1 %v1466_v20  ;;  %v1568_v13 = vld [vmem:[#allocation5 + $0xd8] sm:$0xff] }
 0x152   :  { %1190 = vmatpush.msra.mxu3 %v1431_v53  ;;  %v1544_v53 = vld [vmem:[#allocation5 + $0x98] sm:$0xff]  ;;  %1915 = vst [vmem:[#allocation29_spill] sm:$0xff] %v1568_v13 }
 0x153   :  { %1911 = vst [vmem:[#allocation25_spill] sm:$0xff] %v1544_v53 }
 0x154   :  { %1191 = vmatpush.msra.mxu3 %v1429_v50  ;;  %v1538_v50 = vld [vmem:[#allocation5 + $0x88] sm:$0xff] }
 0x155   :  { %1910 = vst [vmem:[#allocation24_spill] sm:$0xff] %v1538_v50 }
 0x156   :  { %1192 = vmatpush.msra.mxu3 %v1425_v47  ;;  %v1532_v47 = vld [vmem:[#allocation5 + $0x78] sm:$0xff] }
 0x157   :  { %1909 = vst [vmem:[#allocation23_spill] sm:$0xff] %v1532_v47 }
 0x158   :  { %1193 = vmatpush.msra.mxu3 %v1421_v44  ;;  %v1527_v44 = vld [vmem:[#allocation5 + $0x68] sm:$0xff] }
 0x159   :  { %v279_v16 = vpop.f32.mrf.mxu0  ;;  %410 = vmatmul.f32.gmra.mxu3 %v1456_v15  ;;  %338 = vmatmul.f32.gmra.mxu1 %v1472_v23  ;;  %1908 = vst [vmem:[#allocation22_spill] sm:$0xff] %v1527_v44 }
 0x161   :  { %v282_v19 = vpop.f32.mrf.mxu0  ;;  %413 = vmatmul.f32.gmra.mxu3 %v1463_v18  ;;  %341 = vmatmul.f32.gmra.mxu1 %v1478_v25 }
 0x169   :  { %v285_v22 = vpop.f32.mrf.mxu0  ;;  %416 = vmatmul.f32.gmra.mxu3 %v1469_v21  ;;  %344 = vmatmul.f32.gmra.mxu1 %v1491_v28 }
 0x16a   :  { %437 = vmatpush.msra.mxu2 %v285_v22  ;;  %1194 = vmatpush.msra.mxu3 %v285_v22  ;;  %v1572_v22 = vld [vmem:[#allocation5 + $0x110] sm:$0xff] }
 0x16c   :  { %438 = vmatpush.msra.mxu2 %v282_v19  ;;  %1195 = vmatpush.msra.mxu3 %v282_v19 }
 0x16e   :  { %439 = vmatpush.msra.mxu2 %v279_v16  ;;  %1196 = vmatpush.msra.mxu3 %v279_v16  ;;  %v575_v16 = vld [vmem:[#allocation7 + $0x80] sm:$0xff] }
 0x170   :  { %440 = vmatpush.msra.mxu2 %v276_v14  ;;  %1197 = vmatpush.msra.mxu3 %v276_v14  ;;  %v576_v14 = vld [vmem:[#allocation7 + $0x88] sm:$0xff] }
 0x171   :  { %419 = vmatmul.f32.gmra.mxu3 %v1475_v24  ;;  %347 = vmatmul.f32.gmra.mxu1 %v1500_v31 }
 0x172   :  { %441 = vmatpush.msra.mxu2 %v273_v12  ;;  %1198 = vmatpush.msra.mxu3 %v273_v12  ;;  %v1566_v12 = vld [vmem:[#allocation5 + $0x100] sm:$0xff] }
 0x174   :  { %442 = vmatpush.msra.mxu2 %v270_v10  ;;  %1199 = vmatpush.msra.mxu3 %v270_v10  ;;  %v578_v10 = vld [vmem:[#allocation7 + $0x98] sm:$0xff] }
 0x176   :  { %443 = vmatpush.msra.mxu2 %v1442_v9  ;;  %1200 = vmatpush.msra.mxu3 %v1442_v9 }
 0x178   :  { %444 = vmatpush.msra.mxu2 %v1440_v8  ;;  %1201 = vmatpush.msra.mxu3 %v1440_v8  ;;  %v579_v8 = vld [vmem:[#allocation7 + $0xa0] sm:$0xff] }
 0x179   :  { %422 = vmatmul.f32.gmra.mxu3 %v1483_v26  ;;  %445 = vmatmul.f32.vlgmr.msra.gmra.mxu2 %v1485_v27 }
 0x17a   :  { %350 = vmatmul.f32.gmra.mxu1 %v1506_v34  ;;  %591 = vmatpush.msrb.mxu3 %v590_v55  ;;  %v1593_v55 = vld [vmem:[#allocation5 + $0x130] sm:$0xff] }
 0x17c   :  { %592 = vmatpush.msrb.mxu3 %v589_v56  ;;  %v1595_v56 = vld [vmem:[#allocation5 + $0x108] sm:$0xff] }
 0x17d   :  { %1918 = vst [vmem:[#allocation32_spill] sm:$0xff] %v1595_v56 }
 0x17e   :  { %593 = vmatpush.msrb.mxu3 %v588_v58 }
 0x180   :  { %594 = vmatpush.msrb.mxu3 %v587_v60 }
 0x181   :  { %425 = vmatmul.f32.gmra.mxu3 %v1494_v29  ;;  %448 = vmatmul.f32.gmra.mxu2 %v1496_v30  ;;  %v1618_v29 = vld [vmem:[#allocation5 + $0x160] sm:$0xff] }
 0x182   :  { %353 = vmatmul.f32.gmra.mxu1 %v1512_v37  ;;  %595 = vmatpush.msrb.mxu3 %v586_v61  ;;  %1922 = vst [vmem:[#allocation36_spill] sm:$0xff] %v1618_v29 }
 0x184   :  { %596 = vmatpush.msrb.mxu3 %v585_v62 }
 0x186   :  { %597 = vmatpush.msrb.mxu3 %v584_v0 }
 0x188   :  { %598 = vmatpush.msrb.mxu3 %v583_v2  ;;  %v1602_v2 = vld [vmem:[#allocation5 + $0x140] sm:$0xff] }
 0x189   :  { %451 = vmatmul.f32.gmra.mxu2 %v1503_v32  ;;  %517 = vmatmul.f32.vlgmr.msra.gmra.mxu3 %v136_v33 }
 0x18a   :  { %356 = vmatmul.f32.gmra.mxu1 %v1518_v40  ;;  %599 = vmatpush.msrb.mxu3 %v582_v3  ;;  %v1604_v3 = vld [vmem:[#allocation5 + $0x118] sm:$0xff] }
 0x18b   :  { %1919 = vst [vmem:[#allocation33_spill] sm:$0xff] %v1604_v3 }
 0x18c   :  { %600 = vmatpush.msrb.mxu3 %v581_v4 }
 0x18e   :  { %601 = vmatpush.msrb.mxu3 %v580_v6 }
 0x190   :  { %602 = vmatpush.msrb.mxu3 %v579_v8 }
 0x191   :  { %454 = vmatmul.f32.gmra.mxu2 %v1509_v35  ;;  %520 = vmatmul.f32.gmra.mxu3 %v138_v36  ;;  %v1576_v36 = vld [vmem:[#allocation5 + $0xe8] sm:$0xff] }
 0x192   :  { %359 = vmatmul.f32.gmra.mxu1 %v1524_v43  ;;  %603 = vmatpush.msrb.mxu3 %v578_v10  ;;  %1916 = vst [vmem:[#allocation30_spill] sm:$0xff] %v1576_v36 }
 0x194   :  { %604 = vmatpush.msrb.mxu3 %v577_v11 }
 0x196   :  { %605 = vmatpush.msrb.mxu3 %v576_v14  ;;  %v1611_v14 = vld [vmem:[#allocation5 + $0x150] sm:$0xff] }
 0x197   :  { %1920 = vst [vmem:[#allocation34_spill] sm:$0xff] %v1611_v14 }
 0x198   :  { %606 = vmatpush.msrb.mxu3 %v575_v16  ;;  %v1613_v16 = vld [vmem:[#allocation5 + $0x128] sm:$0xff] }
 0x199   :  { %457 = vmatmul.f32.gmra.mxu2 %v1515_v38  ;;  %523 = vmatmul.f32.gmra.mxu3 %v140_v39  ;;  %1921 = vst [vmem:[#allocation35_spill] sm:$0xff] %v1613_v16 }
 0x19a   :  { %362 = vmatmul.f32.gmra.mxu1 %v1530_v46 }
 0x1a1   :  { %460 = vmatmul.f32.gmra.mxu2 %v1521_v41  ;;  %526 = vmatmul.f32.gmra.mxu3 %v142_v42  ;;  %v1580_v42 = vld [vmem:[#allocation5 + $0x120] sm:$0xff] }
 0x1a2   :  { %365 = vmatmul.f32.gmra.mxu1 %v1536_v49 }
 0x1a9   :  { %463 = vmatmul.f32.gmra.mxu2 %v1527_v44  ;;  %529 = vmatmul.f32.gmra.mxu3 %v144_v45  ;;  %v1582_v45 = vld [vmem:[#allocation5 + $0xf8] sm:$0xff] }
 0x1aa   :  { %368 = vmatmul.f32.gmra.mxu1 %v1542_v52  ;;  %1917 = vst [vmem:[#allocation31_spill] sm:$0xff] %v1582_v45 }
 0x1b1   :  { %466 = vmatmul.f32.gmra.mxu2 %v1532_v47  ;;  %532 = vmatmul.f32.gmra.mxu3 %v146_v48 }
 0x1b2   :  { %371 = vmatmul.f32.gmra.mxu1 %v1548_v57 }
 0x1b9   :  { %469 = vmatmul.f32.gmra.mxu2 %v1538_v50  ;;  %535 = vmatmul.f32.gmra.mxu3 %v148_v51 }
 0x1ba   :  { %374 = vmatmul.f32.gmra.mxu1 %v1554_v63 }
 0x1c1   :  { %472 = vmatmul.f32.gmra.mxu2 %v1544_v53  ;;  %538 = vmatmul.f32.gmra.mxu3 %v150_v54  ;;  %v1591_v54 = vld [vmem:[%s1869_s3] ss:$0 sm:$0xff] }
 0x1c2   :  { %377 = vmatmul.f32.gmra.mxu1 %v1560_v5 }
 0x1c6   :  { %v333_v9 = vpop.f32.mrf.mxu1 }
 0x1c7   :  { %v334_v58 = vadd.f32 %v1591_v54, %v333_v9 }
 0x1c9   :  { %475 = vmatmul.f32.gmra.mxu2 %v1550_v59 }
 0x1ca   :  { %380 = vmatmul.f32.gmra.mxu1 %v1566_v12 }
 0x1cc   :  { %v1574_v33 = vpop.f32.mrf.mxu3 }
 0x1ce   :  { %v336_v19 = vpop.f32.mrf.mxu1 }
 0x1cf   :  { %v337_v6 = vadd.f32 %v1591_v54, %v336_v19 }
 0x1d1   :  { %478 = vmatmul.f32.gmra.mxu2 %v1556_v1 }
 0x1d2   :  { %383 = vmatmul.f32.gmra.mxu1 %v1572_v22 }
 0x1d4   :  { %v1585_v48 = vpop.f32.mrf.mxu3 }
 0x1d6   :  { %v339_v39 = vpop.f32.mrf.mxu1 }
 0x1d9   :  { %481 = vmatmul.f32.gmra.mxu2 %v1562_v7 }
 0x1da   :  { %386 = vmatmul.f32.gmra.mxu1 %v1580_v42 }
 0x1dc   :  { %v1600_v61 = vpop.f32.mrf.mxu3 }
 0x1de   :  { %v342_v51 = vpop.f32.mrf.mxu1 }
 0x1e1   :  { %484 = vmatmul.f32.gmra.mxu2 %v1568_v13 }
 0x1e2   :  { %389 = vmatmul.f32.gmra.mxu1 %v1593_v55 }
 0x1e4   :  { %v1609_v10 = vpop.f32.mrf.mxu3 }
 0x1e6   :  { %v345_v60 = vpop.f32.mrf.mxu1 }
 0x1e9   :  { %487 = vmatmul.f32.gmra.mxu2 %v1576_v36 }
 0x1ea   :  { %392 = vmatmul.f32.gmra.mxu1 %v1602_v2 }
 0x1ec   :  { %v1620_v26 = vpop.f32.mrf.mxu3 }
 0x1ee   :  { %v348_v8 = vpop.f32.mrf.mxu1 }
 0x1f1   :  { %490 = vmatmul.f32.gmra.mxu2 %v1582_v45 }
 0x1f2   :  { %395 = vmatmul.f32.gmra.mxu1 %v1611_v14 }
 0x1f4   :  { %v1632_v24 = vpop.f32.mrf.mxu3 }
 0x1f9   :  { %493 = vmatmul.f32.gmra.mxu2 %v1595_v56  ;;  %v1636_v56 = vld [vmem:[#allocation5 + $0x158] sm:$0xff] }
 0x1fa   :  { %398 = vmatmul.f32.gmra.mxu1 %v1618_v29  ;;  %1926 = vst [vmem:[#allocation40_spill] sm:$0xff] %v1636_v56 }
 0x1fc   :  { %v446_v62 = vpop.f32.mrf.mxu2 }
 0x1fd   :  { %v447_v0 = vadd.f32 %v446_v62, %v334_v58  ;;  %v340_v62 = vadd.f32 %v1591_v54, %v339_v39 }
 0x1ff   :  { %v542_v4 = vmax.f32 %v447_v0, 0.0  ;;  %v351_v0 = vpop.f32.mrf.mxu1 }
 0x201   :  { %496 = vmatmul.f32.gmra.mxu2 %v1604_v3  ;;  %607 = vmatmul.f32.vlgmr.msrb.gmra.mxu3 %v542_v4  ;;  %v1627_v3 = vld [vmem:[#allocation5 + $0x170] sm:$0xff] }
 0x202   :  { %1924 = vst [vmem:[#allocation38_spill] sm:$0xff] %v1627_v3  ;;  %401 = vmatmul.f32.gmra.mxu1 %v1627_v3 }
 0x204   :  { %v449_v9 = vpop.f32.mrf.mxu2 }
 0x205   :  { %v450_v11 = vadd.f32 %v449_v9, %v337_v6  ;;  %v1622_v6 = vld [vmem:[#allocation5 + $0x138] sm:$0xff] }
 0x206   :  { %1923 = vst [vmem:[#allocation37_spill] sm:$0xff] %v1622_v6 }
 0x207   :  { %v543_v58 = vmax.f32 %v450_v11, 0.0  ;;  %v343_v11 = vadd.f32 %v1591_v54, %v342_v51 }
 0x209   :  { %499 = vmatmul.f32.gmra.mxu2 %v1613_v16  ;;  %610 = vmatmul.f32.gmra.mxu3 %v543_v58  ;;  %v354_v58 = vpop.f32.mrf.mxu1 }
 0x20c   :  { %v452_v4 = vpop.f32.mrf.mxu2 }
 0x20d   :  { %v453_v19 = vadd.f32 %v452_v4, %v340_v62  ;;  %v1629_v62 = vld [vmem:[#allocation5 + $0x148] sm:$0xff] }
 0x20e   :  { %1925 = vst [vmem:[#allocation39_spill] sm:$0xff] %v1629_v62 }
 0x20f   :  { %v544_v9 = vmax.f32 %v453_v19, 0.0  ;;  %v346_v19 = vadd.f32 %v1591_v54, %v345_v60  ;;  %v352_v60 = vadd.f32 %v1591_v54, %v351_v0 }
 0x211   :  { %502 = vmatmul.f32.gmra.mxu2 %v1622_v6  ;;  %613 = vmatmul.f32.gmra.mxu3 %v544_v9  ;;  %v357_v9 = vpop.f32.mrf.mxu1 }
 0x212   :  { %v358_v0 = vadd.f32 %v1591_v54, %v357_v9 }
 0x214   :  { %v455_v16 = vpop.f32.mrf.mxu2 }
 0x215   :  { %v456_v39 = vadd.f32 %v455_v16, %v343_v11  ;;  %v349_v11 = vadd.f32 %v1591_v54, %v348_v8 }
 0x217   :  { %v545_v4 = vmax.f32 %v456_v39, 0.0  ;;  %v1640_v39 = vpop.f32.mrf.mxu3 }
 0x219   :  { %505 = vmatmul.f32.gmra.mxu2 %v1629_v62  ;;  %616 = vmatmul.f32.gmra.mxu3 %v545_v4  ;;  %v360_v21 = vpop.f32.mrf.mxu1  ;;  %v1642_v62 = vld [vmem:[#allocation5 + $0x168] sm:$0xff] }
 0x21a   :  { %1927 = vst [vmem:[#allocation41_spill] sm:$0xff] %v1642_v62 }
 0x21c   :  { %v458_v6 = vpop.f32.mrf.mxu2 }
 0x21d   :  { %v459_v51 = vadd.f32 %v458_v6, %v346_v19 }
 0x21f   :  { %v546_v16 = vmax.f32 %v459_v51, 0.0  ;;  %v1646_v19 = vpop.f32.mrf.mxu3 }
 0x221   :  { %508 = vmatmul.f32.gmra.mxu2 %v1636_v56  ;;  %619 = vmatmul.f32.gmra.mxu3 %v546_v16  ;;  %v363_v6 = vpop.f32.mrf.mxu1  ;;  %v1648_v56 = vld [vmem:[#allocation5 + $0x178] sm:$0xff] }
 0x222   :  { %1928 = vst [vmem:[#allocation42_spill] sm:$0xff] %v1648_v56 }
 0x224   :  { %v461_v45 = vpop.f32.mrf.mxu2 }
 0x225   :  { %v462_v18 = vadd.f32 %v461_v45, %v349_v11  ;;  %v355_v45 = vadd.f32 %v1591_v54, %v354_v58 }
 0x227   :  { %v547_v4 = vmax.f32 %v462_v18, 0.0 }
 0x229   :  { %511 = vmatmul.f32.gmra.mxu2 %v1642_v62  ;;  %622 = vmatmul.f32.gmra.mxu3 %v547_v4  ;;  %v366_v36 = vpop.f32.mrf.mxu1  ;;  %v1652_v62 = vpop.f32.mrf.mxu3 }
 0x22c   :  { %v464_v51 = vpop.f32.mrf.mxu2 }
 0x22d   :  { %v465_v16 = vadd.f32 %v464_v51, %v352_v60 }
 0x22f   :  { %v548_v8 = vmax.f32 %v465_v16, 0.0  ;;  %v361_v16 = vadd.f32 %v1591_v54, %v360_v21 }
 0x231   :  { %514 = vmatmul.f32.gmra.mxu2 %v1648_v56  ;;  %625 = vmatmul.f32.gmra.mxu3 %v548_v8  ;;  %v369_v51 = vpop.f32.mrf.mxu1  ;;  %v1655_v7 = vpop.f32.mrf.mxu3 }
 0x234   :  { %v467_v11 = vpop.f32.mrf.mxu2 }
 0x235   :  { %v468_v18 = vadd.f32 %v467_v11, %v355_v45  ;;  %v364_v45 = vadd.f32 %v1591_v54, %v363_v6 }
 0x237   :  { %v549_v4 = vmax.f32 %v468_v18, 0.0 }
 0x239   :  { %628 = vmatmul.f32.gmra.mxu3 %v549_v4  ;;  %v372_v11 = vpop.f32.mrf.mxu1  ;;  %v1659_v18 = vpop.f32.mrf.mxu3 }
 0x23c   :  { %v470_v15 = vpop.f32.mrf.mxu2 }
 0x23d   :  { %v471_v13 = vadd.f32 %v470_v15, %v358_v0  ;;  %v367_v15 = vadd.f32 %v1591_v54, %v366_v36 }
 0x23f   :  { %v550_v60 = vmax.f32 %v471_v13, 0.0 }
 0x241   :  { %631 = vmatmul.f32.gmra.mxu3 %v550_v60  ;;  %v375_v13 = vpop.f32.mrf.mxu1  ;;  %v1662_v0 = vpop.f32.mrf.mxu3 }
 0x244   :  { %v473_v8 = vpop.f32.mrf.mxu2 }
 0x245   :  { %v474_v58 = vadd.f32 %v473_v8, %v361_v16 }
 0x247   :  { %v551_v56 = vmax.f32 %v474_v58, 0.0 }
 0x249   :  { %634 = vmatmul.f32.gmra.mxu3 %v551_v56  ;;  %v370_v56 = vadd.f32 %v1591_v54, %v369_v51  ;;  %v378_v8 = vpop.f32.mrf.mxu1  ;;  %v1665_v58 = vpop.f32.mrf.mxu3 }
 0x24c   :  { %v476_v4 = vpop.f32.mrf.mxu2 }
 0x24d   :  { %v477_v9 = vadd.f32 %v476_v4, %v364_v45 }
 0x24f   :  { %v552_v1 = vmax.f32 %v477_v9, 0.0 }
 0x251   :  { %637 = vmatmul.f32.gmra.mxu3 %v552_v1  ;;  %v373_v1 = vadd.f32 %v1591_v54, %v372_v11  ;;  %v381_v9 = vpop.f32.mrf.mxu1  ;;  %v1668_v50 = vpop.f32.mrf.mxu3 }
 0x254   :  { %v479_v60 = vpop.f32.mrf.mxu2 }
 0x255   :  { %v480_v21 = vadd.f32 %v479_v60, %v367_v15 }
 0x257   :  { %v553_v59 = vmax.f32 %v480_v21, 0.0  ;;  %v379_v21 = vadd.f32 %v1591_v54, %v378_v8 }
 0x259   :  { %640 = vmatmul.f32.gmra.mxu3 %v553_v59  ;;  %v376_v59 = vadd.f32 %v1591_v54, %v375_v13 }
 0x25c   :  { %v482_v16 = vpop.f32.mrf.mxu2 }
 0x25d   :  { %v483_v6 = vadd.f32 %v482_v16, %v370_v56  ;;  %v384_v56 = vpop.f32.mrf.mxu1  ;;  %v1672_v16 = vpop.f32.mrf.mxu3 }
 0x25f   :  { %v554_v53 = vmax.f32 %v483_v6, 0.0 }
 0x261   :  { %643 = vmatmul.f32.gmra.mxu3 %v554_v53 }
 0x264   :  { %v485_v45 = vpop.f32.mrf.mxu2 }
 0x265   :  { %v486_v36 = vadd.f32 %v485_v45, %v373_v1  ;;  %v382_v1 = vadd.f32 %v1591_v54, %v381_v9  ;;  %v387_v45 = vpop.f32.mrf.mxu1 }
 0x267   :  { %v555_v4 = vmax.f32 %v486_v36, 0.0  ;;  %v1675_v36 = vpop.f32.mrf.mxu3 }
 0x269   :  { %646 = vmatmul.f32.gmra.mxu3 %v555_v4 }
 0x26c   :  { %v488_v15 = vpop.f32.mrf.mxu2 }
 0x26d   :  { %v489_v51 = vadd.f32 %v488_v15, %v376_v59  ;;  %v385_v59 = vadd.f32 %v1591_v54, %v384_v56 }
 0x26f   :  { %v556_v60 = vmax.f32 %v489_v51, 0.0 }
 0x271   :  { %649 = vmatmul.f32.gmra.mxu3 %v556_v60  ;;  %v390_v60 = vpop.f32.mrf.mxu1 }
 0x274   :  { %v491_v53 = vpop.f32.mrf.mxu2 }
 0x275   :  { %v492_v11 = vadd.f32 %v491_v53, %v379_v21  ;;  %v388_v21 = vadd.f32 %v1591_v54, %v387_v45 }
 0x277   :  { %v557_v6 = vmax.f32 %v492_v11, 0.0 }
 0x279   :  { %652 = vmatmul.f32.gmra.mxu3 %v557_v6  ;;  %v393_v29 = vpop.f32.mrf.mxu1 }
 0x27c   :  { %v494_v4 = vpop.f32.mrf.mxu2 }
 0x27d   :  { %v495_v13 = vadd.f32 %v494_v4, %v382_v1 }
 0x27f   :  { %v558_v3 = vmax.f32 %v495_v13, 0.0 }
 0x281   :  { %655 = vmatmul.f32.gmra.mxu3 %v558_v3  ;;  %v391_v3 = vadd.f32 %v1591_v54, %v390_v60 }
 0x284   :  { %v497_v15 = vpop.f32.mrf.mxu2  ;;  %v1678_v8 = vpop.f32.mrf.mxu3 }
 0x285   :  { %v498_v51 = vadd.f32 %v497_v15, %v385_v59  ;;  %v394_v59 = vadd.f32 %v1591_v54, %v393_v29 }
 0x287   :  { %v559_v47 = vmax.f32 %v498_v51, 0.0 }
 0x289   :  { %658 = vmatmul.f32.gmra.mxu3 %v559_v47  ;;  %v396_v47 = vpop.f32.mrf.mxu1 }
 0x28c   :  { %v500_v53 = vpop.f32.mrf.mxu2  ;;  %v1681_v9 = vpop.f32.mrf.mxu3 }
 0x28d   :  { %v501_v11 = vadd.f32 %v500_v53, %v388_v21  ;;  %v397_v21 = vadd.f32 %v1591_v54, %v396_v47 }
 0x28f   :  { %v560_v6 = vmax.f32 %v501_v11, 0.0 }
 0x291   :  { %661 = vmatmul.f32.gmra.mxu3 %v560_v6  ;;  %v399_v53 = vpop.f32.mrf.mxu1 }
 0x294   :  { %v503_v1 = vpop.f32.mrf.mxu2  ;;  %v1684_v56 = vpop.f32.mrf.mxu3 }
 0x295   :  { %v504_v4 = vadd.f32 %v503_v1, %v391_v3  ;;  %v400_v3 = vadd.f32 %v1591_v54, %v399_v53 }
 0x297   :  { %v561_v13 = vmax.f32 %v504_v4, 0.0 }
 0x299   :  { %664 = vmatmul.f32.gmra.mxu3 %v561_v13  ;;  %v402_v13 = vpop.f32.mrf.mxu1 }
 0x29c   :  { %v506_v15 = vpop.f32.mrf.mxu2  ;;  %v1687_v45 = vpop.f32.mrf.mxu3 }
 0x29d   :  { %v507_v51 = vadd.f32 %v506_v15, %v394_v59 }
 0x29f   :  { %v562_v44 = vmax.f32 %v507_v51, 0.0 }
 0x2a1   :  { %667 = vmatmul.f32.gmra.mxu3 %v562_v44  ;;  %v403_v44 = vadd.f32 %v1591_v54, %v402_v13 }
 0x2a4   :  { %v509_v11 = vpop.f32.mrf.mxu2  ;;  %v1690_v60 = vpop.f32.mrf.mxu3 }
 0x2a5   :  { %v510_v6 = vadd.f32 %v509_v11, %v397_v21  ;;  %v406_v21 = vadd.f32 %v1591_v54, %v1574_v33 }
 0x2a7   :  { %v563_v14 = vmax.f32 %v510_v6, 0.0  ;;  %v409_v6 = vadd.f32 %v1591_v54, %v1585_v48 }
 0x2a9   :  { %670 = vmatmul.f32.gmra.mxu3 %v563_v14  ;;  %v519_v14 = vadd.f32 %v1652_v62, %v406_v21  ;;  %v415_v62 = vadd.f32 %v1591_v54, %v1609_v10 }
 0x2ab   :  { %v566_v11 = vmax.f32 %v519_v14, 0.0 }
 0x2ac   :  { %v512_v1 = vpop.f32.mrf.mxu2  ;;  %v1693_v29 = vpop.f32.mrf.mxu3 }
 0x2ad   :  { %v513_v4 = vadd.f32 %v512_v1, %v400_v3 }
 0x2af   :  { %v564_v41 = vmax.f32 %v513_v4, 0.0  ;;  %v412_v4 = vadd.f32 %v1591_v54, %v1600_v61 }
 0x2b1   :  { %673 = vmatmul.f32.gmra.mxu3 %v564_v41  ;;  %v522_v41 = vadd.f32 %v1655_v7, %v409_v6  ;;  %v525_v13 = vadd.f32 %v1659_v18, %v412_v4  ;;  %v418_v7 = vadd.f32 %v1591_v54, %v1620_v26  ;;  %v421_v18 = vadd.f32 %v1591_v54, %v1632_v24 }
 0x2b3   :  { %v567_v1 = vmax.f32 %v522_v41, 0.0  ;;  %v534_v14 = vadd.f32 %v1668_v50, %v421_v18 }
 0x2b4   :  { %v515_v59 = vpop.f32.mrf.mxu2  ;;  %v626_v47 = vpop.f32.mrf.mxu3 }
 0x2b5   :  { %v516_v15 = vadd.f32 %v515_v59, %v403_v44  ;;  %v568_v44 = vmax.f32 %v525_v13, 0.0  ;;  %v528_v59 = vadd.f32 %v1662_v0, %v415_v62  ;;  %v424_v0 = vadd.f32 %v1591_v54, %v1640_v39  ;;  %v967_v13 = vld [vmem:[#allocation8] sm:$0xff] }
 0x2b6   :  { %v1214_v62 = vld [vmem:[#allocation5 + $0x180] sm:$0xff] }
 0x2b7   :  { %v565_v51 = vmax.f32 %v516_v15, 0.0  ;;  %v569_v15 = vmax.f32 %v528_v59, 0.0  ;;  %v537_v6 = vadd.f32 %v1672_v16, %v424_v0  ;;  %v1939_v59 = vld [vmem:[#allocation28_spill] sm:$0xff] }
 0x2b9   :  { %676 = vmatmul.f32.gmra.mxu3 %v565_v51  ;;  %v531_v51 = vadd.f32 %v1665_v58, %v418_v7  ;;  %v572_v41 = vmax.f32 %v537_v6, 0.0  ;;  %v427_v58 = vadd.f32 %v1591_v54, %v1646_v19  ;;  %v1940_v7 = vld [vmem:[#allocation29_spill] sm:$0xff] }
 0x2bb   :  { %v570_v21 = vmax.f32 %v531_v51, 0.0 }
 0x2bc   :  { %v629_v53 = vpop.f32.mrf.mxu3 }
 0x2c1   :  { %679 = vmatmul.f32.gmra.mxu3 %v566_v11  ;;  %v571_v11 = vmax.f32 %v534_v14, 0.0  ;;  %v1943_v14 = vld [vmem:[#allocation16_spill] sm:$0xff] }
 0x2c4   :  { %v632_v3 = vpop.f32.mrf.mxu3 }
 0x2c9   :  { %682 = vmatmul.f32.gmra.mxu3 %v567_v1  ;;  %v540_v1 = vadd.f32 %v1675_v36, %v427_v58 }
 0x2cb   :  { %v573_v4 = vmax.f32 %v540_v1, 0.0 }
 0x2cc   :  { %v635_v33 = vpop.f32.mrf.mxu3 }
 0x2d1   :  { %685 = vmatmul.f32.gmra.mxu3 %v568_v44 }
 0x2d4   :  { %v638_v48 = vpop.f32.mrf.mxu3 }
 0x2d9   :  { %688 = vmatmul.f32.gmra.mxu3 %v569_v15  ;;  %v1215_v15 = vld [vmem:[#allocation5 + $0x190] sm:$0xff] }
 0x2dc   :  { %v641_v61 = vpop.f32.mrf.mxu3 }
 0x2e1   :  { %691 = vmatmul.f32.gmra.mxu3 %v570_v21  ;;  %v1942_v21 = vld [vmem:[#allocation30_spill] sm:$0xff] }
 0x2e4   :  { %v644_v10 = vpop.f32.mrf.mxu3 }
 0x2e9   :  { %694 = vmatmul.f32.gmra.mxu3 %v571_v11  ;;  %v1944_v11 = vld [vmem:[#allocation31_spill] sm:$0xff] }
 0x2ec   :  { %v647_v26 = vpop.f32.mrf.mxu3 }
 0x2f1   :  { %697 = vmatmul.f32.gmra.mxu3 %v572_v41 }
 0x2f4   :  { %v650_v24 = vpop.f32.mrf.mxu3 }
 0x2f9   :  { %700 = vmatmul.f32.gmra.mxu3 %v573_v4 }
 0x2fc   :  { %v653_v50 = vpop.f32.mrf.mxu3 }
 0x2fd   :  { %709 = vmatpush.msrb.mxu0 %v653_v50 }
 0x2ff   :  { %710 = vmatpush.msrb.mxu0 %v650_v24  ;;  %v1946_v24 = vld [vmem:[#allocation32_spill] sm:$0xff] }
 0x301   :  { %711 = vmatpush.msrb.mxu0 %v647_v26  ;;  %v1945_v26 = vld [vmem:[#allocation17_spill] sm:$0xff] }
 0x303   :  { %712 = vmatpush.msrb.mxu0 %v644_v10  ;;  %v1776_v10 = vld [vmem:[%s1869_s3 + $0x1] ss:$0 sm:$0xff] }
 0x304   :  { %v1720_v39 = vpop.f32.mrf.mxu3 }
 0x305   :  { %713 = vmatpush.msrb.mxu0 %v641_v61  ;;  %v1941_v61 = vld [vmem:[#allocation15_spill] sm:$0xff] }
 0x307   :  { %714 = vmatpush.msrb.mxu0 %v638_v48 }
 0x309   :  { %715 = vmatpush.msrb.mxu0 %v635_v33  ;;  %v1938_v33 = vld [vmem:[#allocation27_spill] sm:$0xff] }
 0x30b   :  { %716 = vmatpush.msrb.mxu0 %v632_v3  ;;  %v1937_v3 = vld [vmem:[#allocation26_spill] sm:$0xff] }
 0x30c   :  { %v1722_v16 = vpop.f32.mrf.mxu3 }
 0x30d   :  { %717 = vmatpush.msrb.mxu0 %v629_v53  ;;  %v968_v53 = vld [vmem:[#allocation8 + $0x8] sm:$0xff] }
 0x30f   :  { %718 = vmatpush.msrb.mxu0 %v626_v47 }
 0x311   :  { %719 = vmatpush.msrb.mxu0 %v1693_v29 }
 0x313   :  { %720 = vmatpush.msrb.mxu0 %v1690_v60 }
 0x314   :  { %v662_v54 = vpop.f32.mrf.mxu3 }
 0x315   :  { %721 = vmatpush.msrb.mxu0 %v1687_v45 }
 0x317   :  { %722 = vmatpush.msrb.mxu0 %v1684_v56 }
 0x319   :  { %723 = vmatpush.msrb.mxu0 %v1681_v9 }
 0x31b   :  { %724 = vmatpush.msrb.mxu0 %v1678_v8 }
 0x31c   :  { %v665_v19 = vpop.f32.mrf.mxu3  ;;  %725 = vmatmul.f32.vlgmr.msrb.gmra.mxu0 %v1460_v17 }
 0x324   :  { %v668_v36 = vpop.f32.mrf.mxu3  ;;  %728 = vmatmul.f32.gmra.mxu0 %v1466_v20 }
 0x32c   :  { %v671_v47 = vpop.f32.mrf.mxu3  ;;  %731 = vmatmul.f32.gmra.mxu0 %v1472_v23 }
 0x334   :  { %v674_v29 = vpop.f32.mrf.mxu3  ;;  %734 = vmatmul.f32.gmra.mxu0 %v1478_v25 }
 0x33c   :  { %v677_v60 = vpop.f32.mrf.mxu3  ;;  %737 = vmatmul.f32.gmra.mxu0 %v1491_v28  ;;  %v982_v28 = vld [vmem:[#allocation8 + $0x78] sm:$0xff] }
 0x33d   :  { %987 = vmatpush.msrb.mxu2 %v982_v28 }
 0x344   :  { %v680_v56 = vpop.f32.mrf.mxu3  ;;  %740 = vmatmul.f32.gmra.mxu0 %v1500_v31  ;;  %v981_v31 = vld [vmem:[#allocation8 + $0x70] sm:$0xff] }
 0x345   :  { %988 = vmatpush.msrb.mxu2 %v981_v31 }
 0x34c   :  { %v683_v9 = vpop.f32.mrf.mxu3  ;;  %743 = vmatmul.f32.gmra.mxu0 %v1506_v34  ;;  %v980_v34 = vld [vmem:[#allocation8 + $0x68] sm:$0xff] }
 0x34d   :  { %989 = vmatpush.msrb.mxu2 %v980_v34  ;;  %v1952_v34 = vld [vmem:[#allocation37_spill] sm:$0xff] }
 0x354   :  { %v686_v8 = vpop.f32.mrf.mxu3  ;;  %746 = vmatmul.f32.gmra.mxu0 %v1512_v37  ;;  %v979_v37 = vld [vmem:[#allocation8 + $0x60] sm:$0xff] }
 0x355   :  { %990 = vmatpush.msrb.mxu2 %v979_v37 }
 0x35c   :  { %v689_v17 = vpop.f32.mrf.mxu3  ;;  %749 = vmatmul.f32.gmra.mxu0 %v1518_v40  ;;  %v978_v40 = vld [vmem:[#allocation8 + $0x58] sm:$0xff] }
 0x35d   :  { %991 = vmatpush.msrb.mxu2 %v978_v40 }
 0x364   :  { %v692_v20 = vpop.f32.mrf.mxu3  ;;  %752 = vmatmul.f32.gmra.mxu0 %v1524_v43  ;;  %v977_v43 = vld [vmem:[#allocation8 + $0x50] sm:$0xff] }
 0x365   :  { %992 = vmatpush.msrb.mxu2 %v977_v43 }
 0x36c   :  { %v695_v23 = vpop.f32.mrf.mxu3  ;;  %755 = vmatmul.f32.gmra.mxu0 %v1530_v46  ;;  %v976_v46 = vld [vmem:[#allocation8 + $0x48] sm:$0xff] }
 0x36d   :  { %993 = vmatpush.msrb.mxu2 %v976_v46 }
 0x374   :  { %v698_v25 = vpop.f32.mrf.mxu3  ;;  %758 = vmatmul.f32.gmra.mxu0 %v1536_v49  ;;  %v975_v49 = vld [vmem:[#allocation8 + $0x40] sm:$0xff] }
 0x375   :  { %994 = vmatpush.msrb.mxu2 %v975_v49 }
 0x37c   :  { %v701_v45 = vpop.f32.mrf.mxu3  ;;  %761 = vmatmul.f32.gmra.mxu0 %v1542_v52  ;;  %v974_v52 = vld [vmem:[#allocation8 + $0x38] sm:$0xff] }
 0x37d   :  { %822 = vmatpush.msrb.mxu1 %v701_v45  ;;  %995 = vmatpush.msrb.mxu2 %v974_v52  ;;  %v1953_v52 = vld [vmem:[#allocation39_spill] sm:$0xff] }
 0x37f   :  { %823 = vmatpush.msrb.mxu1 %v698_v25  ;;  %v1951_v25 = vld [vmem:[#allocation20_spill] sm:$0xff] }
 0x381   :  { %824 = vmatpush.msrb.mxu1 %v695_v23 }
 0x383   :  { %825 = vmatpush.msrb.mxu1 %v692_v20 }
 0x384   :  { %764 = vmatmul.f32.gmra.mxu0 %v1548_v57  ;;  %v973_v57 = vld [vmem:[#allocation8 + $0x30] sm:$0xff] }
 0x385   :  { %826 = vmatpush.msrb.mxu1 %v689_v17  ;;  %996 = vmatpush.msrb.mxu2 %v973_v57  ;;  %v1950_v17 = vld [vmem:[#allocation35_spill] sm:$0xff] }
 0x387   :  { %827 = vmatpush.msrb.mxu1 %v686_v8 }
 0x389   :  { %828 = vmatpush.msrb.mxu1 %v683_v9 }
 0x38b   :  { %829 = vmatpush.msrb.mxu1 %v680_v56 }
 0x38c   :  { %767 = vmatmul.f32.gmra.mxu0 %v1554_v63  ;;  %v972_v63 = vld [vmem:[#allocation8 + $0x28] sm:$0xff] }
 0x38d   :  { %830 = vmatpush.msrb.mxu1 %v677_v60  ;;  %997 = vmatpush.msrb.mxu2 %v972_v63  ;;  %v1949_v60 = vld [vmem:[#allocation19_spill] sm:$0xff] }
 0x38f   :  { %831 = vmatpush.msrb.mxu1 %v674_v29 }
 0x391   :  { %832 = vmatpush.msrb.mxu1 %v671_v47 }
 0x393   :  { %833 = vmatpush.msrb.mxu1 %v668_v36  ;;  %v1948_v36 = vld [vmem:[#allocation33_spill] sm:$0xff] }
 0x394   :  { %770 = vmatmul.f32.gmra.mxu0 %v1560_v5  ;;  %v1930_v5 = vld [vmem:[#allocation34_spill] sm:$0xff] }
 0x395   :  { %834 = vmatpush.msrb.mxu1 %v665_v19 }
 0x397   :  { %835 = vmatpush.msrb.mxu1 %v662_v54 }
 0x399   :  { %836 = vmatpush.msrb.mxu1 %v1722_v16  ;;  %v726_v44 = vpop.f32.mrf.mxu0 }
 0x39a   :  { %v727_v0 = vadd.f32 %v1776_v10, %v726_v44  ;;  %v1956_v44 = vld [vmem:[#allocation42_spill] sm:$0xff] }
 0x39b   :  { %837 = vmatpush.msrb.mxu1 %v1720_v39  ;;  %v1947_v39 = vld [vmem:[#allocation18_spill] sm:$0xff] }
 0x39c   :  { %838 = vmatmul.f32.vlgmr.msrb.gmra.mxu1 %v1485_v27  ;;  %773 = vmatmul.f32.gmra.mxu0 %v1566_v12  ;;  %v971_v27 = vld [vmem:[#allocation8 + $0x20] sm:$0xff]  ;;  %v1931_v12 = vld [vmem:[#allocation22_spill] sm:$0xff] }
 0x39d   :  { %998 = vmatpush.msrb.mxu2 %v971_v27 }
 0x3a1   :  { %v729_v48 = vpop.f32.mrf.mxu0 }
 0x3a2   :  { %v730_v4 = vadd.f32 %v1776_v10, %v729_v48 }
 0x3a4   :  { %841 = vmatmul.f32.gmra.mxu1 %v1496_v30  ;;  %776 = vmatmul.f32.gmra.mxu0 %v1572_v22  ;;  %v1929_v30 = vld [vmem:[#allocation21_spill] sm:$0xff]  ;;  %v1932_v22 = vld [vmem:[#allocation36_spill] sm:$0xff] }
 0x3a9   :  { %v732_v51 = vpop.f32.mrf.mxu0 }
 0x3aa   :  { %v733_v47 = vadd.f32 %v1776_v10, %v732_v51  ;;  %v1216_v51 = vld [vmem:[#allocation5 + $0x188] sm:$0xff] }
 0x3ac   :  { %844 = vmatmul.f32.gmra.mxu1 %v1503_v32  ;;  %779 = vmatmul.f32.gmra.mxu0 %v1580_v42  ;;  %v970_v32 = vld [vmem:[#allocation8 + $0x18] sm:$0xff]  ;;  %v969_v42 = vld [vmem:[#allocation8 + $0x10] sm:$0xff] }
 0x3ad   :  { %999 = vmatpush.msrb.mxu2 %v970_v32 }
 0x3af   :  { %1000 = vmatpush.msrb.mxu2 %v969_v42 }
 0x3b1   :  { %1001 = vmatpush.msrb.mxu2 %v968_v53  ;;  %v735_v18 = vpop.f32.mrf.mxu0 }
 0x3b2   :  { %v736_v20 = vadd.f32 %v1776_v10, %v735_v18 }
 0x3b3   :  { %1002 = vmatpush.msrb.mxu2 %v967_v13 }
 0x3b4   :  { %847 = vmatmul.f32.gmra.mxu1 %v1509_v35  ;;  %782 = vmatmul.f32.gmra.mxu0 %v1593_v55  ;;  %v1933_v35 = vld [vmem:[#allocation23_spill] sm:$0xff]  ;;  %v1934_v55 = vld [vmem:[#allocation38_spill] sm:$0xff] }
 0x3b9   :  { %v738_v6 = vpop.f32.mrf.mxu0 }
 0x3ba   :  { %v739_v37 = vadd.f32 %v1776_v10, %v738_v6 }
 0x3bc   :  { %850 = vmatmul.f32.gmra.mxu1 %v1515_v38  ;;  %785 = vmatmul.f32.gmra.mxu0 %v1602_v2  ;;  %v1935_v38 = vld [vmem:[#allocation24_spill] sm:$0xff]  ;;  %v1936_v2 = vld [vmem:[#allocation25_spill] sm:$0xff] }
 0x3c1   :  { %v741_v50 = vpop.f32.mrf.mxu0 }
 0x3c2   :  { %v742_v57 = vadd.f32 %v1776_v10, %v741_v50 }
 0x3c4   :  { %853 = vmatmul.f32.gmra.mxu1 %v1929_v30  ;;  %788 = vmatmul.f32.gmra.mxu0 %v1930_v5 }
 0x3c9   :  { %v744_v29 = vpop.f32.mrf.mxu0 }
 0x3ca   :  { %v745_v32 = vadd.f32 %v1776_v10, %v744_v29 }
 0x3cc   :  { %856 = vmatmul.f32.gmra.mxu1 %v1931_v12  ;;  %791 = vmatmul.f32.gmra.mxu0 %v1932_v22  ;;  %v1954_v12 = vld [vmem:[#allocation40_spill] sm:$0xff] }
 0x3d1   :  { %v747_v23 = vpop.f32.mrf.mxu0 }
 0x3d4   :  { %859 = vmatmul.f32.gmra.mxu1 %v1933_v35  ;;  %794 = vmatmul.f32.gmra.mxu0 %v1934_v55 }
 0x3d9   :  { %v750_v40 = vpop.f32.mrf.mxu0 }
 0x3dc   :  { %862 = vmatmul.f32.gmra.mxu1 %v1935_v38  ;;  %797 = vmatmul.f32.gmra.mxu0 %v1214_v62  ;;  %v1955_v38 = vld [vmem:[#allocation41_spill] sm:$0xff]  ;;  %v751_v62 = vadd.f32 %v1776_v10, %v750_v40 }
 0x3e1   :  { %v753_v63 = vpop.f32.mrf.mxu0 }
 0x3e4   :  { %865 = vmatmul.f32.gmra.mxu1 %v1936_v2  ;;  %800 = vmatmul.f32.gmra.mxu0 %v1215_v15  ;;  %v748_v2 = vadd.f32 %v1776_v10, %v747_v23 }
 0x3e9   :  { %v756_v22 = vpop.f32.mrf.mxu0 }
 0x3ea   :  { %v757_v6 = vadd.f32 %v1776_v10, %v756_v22 }
 0x3ec   :  { %868 = vmatmul.f32.gmra.mxu1 %v1937_v3  ;;  %803 = vmatmul.f32.gmra.mxu0 %v1941_v61  ;;  %v754_v61 = vadd.f32 %v1776_v10, %v753_v63 }
 0x3f1   :  { %v759_v53 = vpop.f32.mrf.mxu0 }
 0x3f4   :  { %871 = vmatmul.f32.gmra.mxu1 %v1938_v33  ;;  %806 = vmatmul.f32.gmra.mxu0 %v1943_v14 }
 0x3fc   :  { %874 = vmatmul.f32.gmra.mxu1 %v1939_v59  ;;  %809 = vmatmul.f32.gmra.mxu0 %v1945_v26  ;;  %v762_v59 = vpop.f32.mrf.mxu0 }
 0x404   :  { %877 = vmatmul.f32.gmra.mxu1 %v1940_v7  ;;  %812 = vmatmul.f32.gmra.mxu0 %v1947_v39 }
 0x40c   :  { %880 = vmatmul.f32.gmra.mxu1 %v1942_v21  ;;  %815 = vmatmul.f32.gmra.mxu0 %v1949_v60  ;;  %v765_v21 = vpop.f32.mrf.mxu0 }
 0x414   :  { %883 = vmatmul.f32.gmra.mxu1 %v1944_v11  ;;  %818 = vmatmul.f32.gmra.mxu0 %v1951_v25  ;;  %v768_v26 = vpop.f32.mrf.mxu0 }
 0x419   :  { %v839_v41 = vpop.f32.mrf.mxu1 }
 0x41a   :  { %v840_v58 = vadd.f32 %v839_v41, %v727_v0  ;;  %v1217_v0 = vld [vmem:[#allocation5 + $0x198] sm:$0xff] }
 0x41c   :  { %v935_v1 = vmax.f32 %v840_v58, 0.0  ;;  %886 = vmatmul.f32.gmra.mxu1 %v1946_v24  ;;  %v1218_v24 = vld [vmem:[#allocation5 + $0x1a8] sm:$0xff]  ;;  %v771_v50 = vpop.f32.mrf.mxu0 }
 0x41e   :  { %1003 = vmatmul.f32.vlgmr.msrb.gmra.mxu2 %v935_v1 }
 0x421   :  { %v842_v16 = vpop.f32.mrf.mxu1 }
 0x422   :  { %v843_v54 = vadd.f32 %v842_v16, %v730_v4  ;;  %v760_v4 = vadd.f32 %v1776_v10, %v759_v53 }
 0x424   :  { %v936_v19 = vmax.f32 %v843_v54, 0.0  ;;  %889 = vmatmul.f32.gmra.mxu1 %v1948_v36  ;;  %v763_v36 = vadd.f32 %v1776_v10, %v762_v59 }
 0x426   :  { %1006 = vmatmul.f32.gmra.mxu2 %v936_v19  ;;  %v1219_v19 = vld [vmem:[#allocation5 + $0x1b8] sm:$0xff] }
 0x429   :  { %v845_v56 = vpop.f32.mrf.mxu1 }
 0x42a   :  { %v846_v9 = vadd.f32 %v845_v56, %v733_v47  ;;  %v774_v47 = vpop.f32.mrf.mxu0 }
 0x42c   :  { %v937_v8 = vmax.f32 %v846_v9, 0.0  ;;  %892 = vmatmul.f32.gmra.mxu1 %v1950_v17  ;;  %v1220_v9 = vld [vmem:[#allocation5 + $0x1c8] sm:$0xff] }
 0x42e   :  { %1009 = vmatmul.f32.gmra.mxu2 %v937_v8  ;;  %v766_v8 = vadd.f32 %v1776_v10, %v765_v21 }
 0x431   :  { %v848_v28 = vpop.f32.mrf.mxu1 }
 0x432   :  { %v849_v31 = vadd.f32 %v848_v28, %v736_v20  ;;  %v777_v17 = vpop.f32.mrf.mxu0  ;;  %v1221_v28 = vld [vmem:[#allocation5 + $0x1d8] sm:$0xff] }
 0x434   :  { %v938_v45 = vmax.f32 %v849_v31, 0.0  ;;  %895 = vmatmul.f32.gmra.mxu1 %v1952_v34  ;;  %v769_v31 = vadd.f32 %v1776_v10, %v768_v26 }
 0x436   :  { %1012 = vmatmul.f32.gmra.mxu2 %v938_v45 }
 0x439   :  { %v851_v43 = vpop.f32.mrf.mxu1 }
 0x43a   :  { %v852_v46 = vadd.f32 %v851_v43, %v739_v37  ;;  %v780_v45 = vpop.f32.mrf.mxu0  ;;  %v1222_v43 = vld [vmem:[#allocation5 + $0x1e8] sm:$0xff] }
 0x43c   :  { %v939_v49 = vmax.f32 %v852_v46, 0.0  ;;  %898 = vmatmul.f32.gmra.mxu1 %v1953_v52  ;;  %v772_v46 = vadd.f32 %v1776_v10, %v771_v50 }
 0x43e   :  { %1015 = vmatmul.f32.gmra.mxu2 %v939_v49 }
 0x441   :  { %v854_v27 = vpop.f32.mrf.mxu1 }
 0x442   :  { %v855_v30 = vadd.f32 %v854_v27, %v742_v57  ;;  %v783_v57 = vpop.f32.mrf.mxu0  ;;  %v1223_v27 = vld [vmem:[#allocation5 + $0x1f8] sm:$0xff] }
 0x444   :  { %v940_v5 = vmax.f32 %v855_v30, 0.0  ;;  %901 = vmatmul.f32.gmra.mxu1 %v1954_v12  ;;  %v775_v30 = vadd.f32 %v1776_v10, %v774_v47 }
 0x446   :  { %1018 = vmatmul.f32.gmra.mxu2 %v940_v5 }
 0x449   :  { %v857_v35 = vpop.f32.mrf.mxu1 }
 0x44a   :  { %v858_v42 = vadd.f32 %v857_v35, %v745_v32  ;;  %v786_v22 = vpop.f32.mrf.mxu0  ;;  %v778_v35 = vadd.f32 %v1776_v10, %v777_v17 }
 0x44c   :  { %v941_v55 = vmax.f32 %v858_v42, 0.0  ;;  %904 = vmatmul.f32.gmra.mxu1 %v1955_v38  ;;  %v1812_v42 = vld [vmem:[%s1871_s5] ss:$0 sm:$0xff]  ;;  %s1360_s5 = smov [#allocation10]  }
 0x44d   :  { %s1136_s22 = sshll.u32 %s1360_s5, 4  ;;  %s1137_s22 = int_to_ptr.vmem [resolvable:$true] %s1136_s22 }
 0x44e   :  { %1021 = vmatmul.f32.gmra.mxu2 %v941_v55 }
 0x451   :  { %v860_v3 = vpop.f32.mrf.mxu1 }
 0x452   :  { %v861_v13 = vadd.f32 %v860_v3, %v748_v2 }
 0x454   :  { %v942_v33 = vmax.f32 %v861_v13, 0.0  ;;  %907 = vmatmul.f32.gmra.mxu1 %v1956_v44  ;;  %v781_v13 = vadd.f32 %v1776_v10, %v780_v45 }
 0x456   :  { %1024 = vmatmul.f32.gmra.mxu2 %v942_v33  ;;  %v789_v33 = vpop.f32.mrf.mxu0 }
 0x459   :  { %v863_v48 = vpop.f32.mrf.mxu1 }
 0x45a   :  { %v864_v15 = vadd.f32 %v863_v48, %v751_v62 }
 0x45c   :  { %v943_v7 = vmax.f32 %v864_v15, 0.0  ;;  %910 = vmatmul.f32.gmra.mxu1 %v1216_v51 }
 0x45e   :  { %1027 = vmatmul.f32.gmra.mxu2 %v943_v7  ;;  %v784_v7 = vadd.f32 %v1776_v10, %v783_v57  ;;  %v792_v51 = vpop.f32.mrf.mxu0 }
 0x45f   :  { %v793_v47 = vadd.f32 %v1776_v10, %v792_v51 }
 0x461   :  { %v866_v18 = vpop.f32.mrf.mxu1 }
 0x462   :  { %v867_v14 = vadd.f32 %v866_v18, %v754_v61 }
 0x464   :  { %v944_v11 = vmax.f32 %v867_v14, 0.0  ;;  %913 = vmatmul.f32.gmra.mxu1 %v1217_v0  ;;  %v787_v0 = vadd.f32 %v1776_v10, %v786_v22 }
 0x466   :  { %1030 = vmatmul.f32.gmra.mxu2 %v944_v11 }
 0x469   :  { %v869_v41 = vpop.f32.mrf.mxu1 }
 0x46a   :  { %v870_v58 = vadd.f32 %v869_v41, %v757_v6 }
 0x46c   :  { %v945_v1 = vmax.f32 %v870_v58, 0.0  ;;  %916 = vmatmul.f32.gmra.mxu1 %v1218_v24 }
 0x46e   :  { %1033 = vmatmul.f32.gmra.mxu2 %v945_v1  ;;  %v795_v1 = vpop.f32.mrf.mxu0 }
 0x46f   :  { %v796_v17 = vadd.f32 %v1776_v10, %v795_v1 }
 0x471   :  { %v872_v39 = vpop.f32.mrf.mxu1 }
 0x472   :  { %v873_v16 = vadd.f32 %v872_v39, %v760_v4  ;;  %v790_v4 = vadd.f32 %v1776_v10, %v789_v33 }
 0x474   :  { %v946_v54 = vmax.f32 %v873_v16, 0.0  ;;  %919 = vmatmul.f32.gmra.mxu1 %v1219_v19 }
 0x476   :  { %1036 = vmatmul.f32.gmra.mxu2 %v946_v54 }
 0x479   :  { %v875_v29 = vpop.f32.mrf.mxu1 }
 0x47a   :  { %v876_v60 = vadd.f32 %v875_v29, %v763_v36  ;;  %v798_v36 = vpop.f32.mrf.mxu0 }
 0x47c   :  { %v947_v56 = vmax.f32 %v876_v60, 0.0  ;;  %922 = vmatmul.f32.gmra.mxu1 %v1220_v9 }
 0x47e   :  { %1039 = vmatmul.f32.gmra.mxu2 %v947_v56 }
 0x481   :  { %v878_v20 = vpop.f32.mrf.mxu1 }
 0x482   :  { %v879_v23 = vadd.f32 %v878_v20, %v766_v8  ;;  %v801_v20 = vpop.f32.mrf.mxu0 }
 0x483   :  { %v802_v57 = vadd.f32 %v1776_v10, %v801_v20 }
 0x484   :  { %v948_v25 = vmax.f32 %v879_v23, 0.0  ;;  %925 = vmatmul.f32.gmra.mxu1 %v1221_v28 }
 0x486   :  { %1042 = vmatmul.f32.gmra.mxu2 %v948_v25 }
 0x489   :  { %v881_v34 = vpop.f32.mrf.mxu1 }
 0x48a   :  { %v882_v37 = vadd.f32 %v881_v34, %v769_v31  ;;  %v799_v34 = vadd.f32 %v1776_v10, %v798_v36 }
 0x48c   :  { %v949_v40 = vmax.f32 %v882_v37, 0.0  ;;  %928 = vmatmul.f32.gmra.mxu1 %v1222_v43  ;;  %v804_v37 = vpop.f32.mrf.mxu0 }
 0x48d   :  { %v805_v22 = vadd.f32 %v1776_v10, %v804_v37 }
 0x48e   :  { %1045 = vmatmul.f32.gmra.mxu2 %v949_v40 }
 0x491   :  { %v884_v49 = vpop.f32.mrf.mxu1 }
 0x492   :  { %v885_v52 = vadd.f32 %v884_v49, %v772_v46 }
 0x494   :  { %v950_v63 = vmax.f32 %v885_v52, 0.0  ;;  %931 = vmatmul.f32.gmra.mxu1 %v1223_v27 }
 0x496   :  { %1048 = vmatmul.f32.gmra.mxu2 %v950_v63 }
 0x499   :  { %v887_v5 = vpop.f32.mrf.mxu1 }
 0x49a   :  { %v888_v12 = vadd.f32 %v887_v5, %v775_v30 }
 0x49c   :  { %v951_v32 = vmax.f32 %v888_v12, 0.0  ;;  %v807_v12 = vpop.f32.mrf.mxu0 }
 0x49e   :  { %1051 = vmatmul.f32.gmra.mxu2 %v951_v32 }
 0x4a1   :  { %v890_v55 = vpop.f32.mrf.mxu1  ;;  %v1004_v38 = vpop.f32.mrf.mxu2 }
 0x4a2   :  { %v891_v2 = vadd.f32 %v890_v55, %v778_v35  ;;  %v1005_v53 = vadd.f32 %v1812_v42, %v1004_v38 }
 0x4a4   :  { %v952_v3 = vmax.f32 %v891_v2, 0.0  ;;  %1100 = vst [vmem:[#allocation10] sm:$0xff] %v1005_v53 }
 0x4a6   :  { %1054 = vmatmul.f32.gmra.mxu2 %v952_v3  ;;  %v810_v3 = vpop.f32.mrf.mxu0 }
 0x4a9   :  { %v893_v44 = vpop.f32.mrf.mxu1  ;;  %v1007_v62 = vpop.f32.mrf.mxu2 }
 0x4aa   :  { %v894_v59 = vadd.f32 %v893_v44, %v781_v13  ;;  %v1008_v48 = vadd.f32 %v1812_v42, %v1007_v62  ;;  %v808_v13 = vadd.f32 %v1776_v10, %v807_v12 }
 0x4ac   :  { %v953_v15 = vmax.f32 %v894_v59, 0.0  ;;  %1101 = vst [vmem:[#allocation10 + $0x8] sm:$0xff] %v1008_v48 }
 0x4ae   :  { %1057 = vmatmul.f32.gmra.mxu2 %v953_v15  ;;  %v811_v15 = vadd.f32 %v1776_v10, %v810_v3 }
 0x4b1   :  { %v896_v61 = vpop.f32.mrf.mxu1  ;;  %v1010_v21 = vpop.f32.mrf.mxu2 }
 0x4b2   :  { %v897_v18 = vadd.f32 %v896_v61, %v784_v7  ;;  %v1011_v14 = vadd.f32 %v1812_v42, %v1010_v21  ;;  %v813_v7 = vpop.f32.mrf.mxu0 }
 0x4b4   :  { %v954_v11 = vmax.f32 %v897_v18, 0.0  ;;  %1102 = vst [vmem:[#allocation10 + $0x10] sm:$0xff] %v1011_v14 }
 0x4b6   :  { %1060 = vmatmul.f32.gmra.mxu2 %v954_v11  ;;  %v814_v11 = vadd.f32 %v1776_v10, %v813_v7 }
 0x4b9   :  { %v899_v6 = vpop.f32.mrf.mxu1  ;;  %v1013_v26 = vpop.f32.mrf.mxu2 }
 0x4ba   :  { %v900_v41 = vadd.f32 %v899_v6, %v787_v0  ;;  %v1014_v58 = vadd.f32 %v1812_v42, %v1013_v26  ;;  %v816_v0 = vpop.f32.mrf.mxu0 }
 0x4bc   :  { %v955_v24 = vmax.f32 %v900_v41, 0.0  ;;  %1103 = vst [vmem:[#allocation10 + $0x18] sm:$0xff] %v1014_v58 }
 0x4be   :  { %1063 = vmatmul.f32.gmra.mxu2 %v955_v24  ;;  %v817_v24 = vadd.f32 %v1776_v10, %v816_v0 }
 0x4c1   :  { %v902_v50 = vpop.f32.mrf.mxu1  ;;  %v1016_v39 = vpop.f32.mrf.mxu2 }
 0x4c2   :  { %v903_v16 = vadd.f32 %v902_v50, %v790_v4  ;;  %v1017_v54 = vadd.f32 %v1812_v42, %v1016_v39 }
 0x4c4   :  { %v956_v19 = vmax.f32 %v903_v16, 0.0  ;;  %1104 = vst [vmem:[#allocation10 + $0x20] sm:$0xff] %v1017_v54  ;;  %v819_v54 = vpop.f32.mrf.mxu0 }
 0x4c5   :  { %v820_v36 = vadd.f32 %v1776_v10, %v819_v54 }
 0x4c6   :  { %1066 = vmatmul.f32.gmra.mxu2 %v956_v19 }
 0x4c9   :  { %v905_v29 = vpop.f32.mrf.mxu1  ;;  %v1019_v60 = vpop.f32.mrf.mxu2 }
 0x4ca   :  { %v906_v56 = vadd.f32 %v905_v29, %v793_v47  ;;  %v1020_v9 = vadd.f32 %v1812_v42, %v1019_v60 }
 0x4cc   :  { %v957_v8 = vmax.f32 %v906_v56, 0.0  ;;  %1105 = vst [vmem:[#allocation10 + $0x28] sm:$0xff] %v1020_v9 }
 0x4ce   :  { %1069 = vmatmul.f32.gmra.mxu2 %v957_v8 }
 0x4d1   :  { %v908_v23 = vpop.f32.mrf.mxu1  ;;  %v1022_v25 = vpop.f32.mrf.mxu2 }
 0x4d2   :  { %v909_v28 = vadd.f32 %v908_v23, %v796_v17  ;;  %v1023_v31 = vadd.f32 %v1812_v42, %v1022_v25 }
 0x4d4   :  { %v958_v45 = vmax.f32 %v909_v28, 0.0  ;;  %1106 = vst [vmem:[#allocation10 + $0x30] sm:$0xff] %v1023_v31 }
 0x4d6   :  { %1072 = vmatmul.f32.gmra.mxu2 %v958_v45 }
 0x4d9   :  { %v911_v40 = vpop.f32.mrf.mxu1  ;;  %v1025_v43 = vpop.f32.mrf.mxu2 }
 0x4da   :  { %v912_v46 = vadd.f32 %v911_v40, %v799_v34  ;;  %v1026_v49 = vadd.f32 %v1812_v42, %v1025_v43 }
 0x4dc   :  { %v959_v52 = vmax.f32 %v912_v46, 0.0  ;;  %1107 = vst [vmem:[#allocation10 + $0x38] sm:$0xff] %v1026_v49 }
 0x4de   :  { %1075 = vmatmul.f32.gmra.mxu2 %v959_v52 }
 0x4e1   :  { %v914_v63 = vpop.f32.mrf.mxu1  ;;  %v1028_v27 = vpop.f32.mrf.mxu2 }
 0x4e2   :  { %v915_v30 = vadd.f32 %v914_v63, %v802_v57  ;;  %v1029_v5 = vadd.f32 %v1812_v42, %v1028_v27 }
 0x4e4   :  { %v960_v32 = vmax.f32 %v915_v30, 0.0  ;;  %1108 = vst [vmem:[#allocation10 + $0x40] sm:$0xff] %v1029_v5 }
 0x4e6   :  { %1078 = vmatmul.f32.gmra.mxu2 %v960_v32 }
 0x4e9   :  { %v917_v35 = vpop.f32.mrf.mxu1  ;;  %v1031_v55 = vpop.f32.mrf.mxu2 }
 0x4ea   :  { %v918_v38 = vadd.f32 %v917_v35, %v805_v22  ;;  %v1032_v2 = vadd.f32 %v1812_v42, %v1031_v55 }
 0x4ec   :  { %v961_v53 = vmax.f32 %v918_v38, 0.0  ;;  %1109 = vst [vmem:[#allocation10 + $0x48] sm:$0xff] %v1032_v2 }
 0x4ee   :  { %1081 = vmatmul.f32.gmra.mxu2 %v961_v53 }
 0x4f1   :  { %v920_v33 = vpop.f32.mrf.mxu1  ;;  %v1034_v44 = vpop.f32.mrf.mxu2 }
 0x4f2   :  { %v921_v62 = vadd.f32 %v920_v33, %v808_v13  ;;  %v1035_v59 = vadd.f32 %v1812_v42, %v1034_v44 }
 0x4f4   :  { %v962_v48 = vmax.f32 %v921_v62, 0.0  ;;  %1110 = vst [vmem:[#allocation10 + $0x50] sm:$0xff] %v1035_v59 }
 0x4f6   :  { %1084 = vmatmul.f32.gmra.mxu2 %v962_v48 }
 0x4f9   :  { %v923_v51 = vpop.f32.mrf.mxu1  ;;  %v1037_v61 = vpop.f32.mrf.mxu2 }
 0x4fa   :  { %v924_v21 = vadd.f32 %v923_v51, %v811_v15  ;;  %v1038_v18 = vadd.f32 %v1812_v42, %v1037_v61 }
 0x4fc   :  { %v963_v14 = vmax.f32 %v924_v21, 0.0  ;;  %1111 = vst [vmem:[#allocation10 + $0x58] sm:$0xff] %v1038_v18 }
 0x4fe   :  { %1087 = vmatmul.f32.gmra.mxu2 %v963_v14 }
 0x501   :  { %v926_v6 = vpop.f32.mrf.mxu1  ;;  %v1040_v26 = vpop.f32.mrf.mxu2 }
 0x502   :  { %v927_v41 = vadd.f32 %v926_v6, %v814_v11  ;;  %v1041_v58 = vadd.f32 %v1812_v42, %v1040_v26 }
 0x504   :  { %v964_v1 = vmax.f32 %v927_v41, 0.0  ;;  %1112 = vst [vmem:[#allocation10 + $0x60] sm:$0xff] %v1041_v58 }
 0x506   :  { %1090 = vmatmul.f32.gmra.mxu2 %v964_v1 }
 0x509   :  { %v929_v4 = vpop.f32.mrf.mxu1  ;;  %v1043_v50 = vpop.f32.mrf.mxu2 }
 0x50a   :  { %v930_v39 = vadd.f32 %v929_v4, %v817_v24  ;;  %v1044_v16 = vadd.f32 %v1812_v42, %v1043_v50 }
 0x50c   :  { %v965_v19 = vmax.f32 %v930_v39, 0.0  ;;  %1113 = vst [vmem:[#allocation10 + $0x68] sm:$0xff] %v1044_v16 }
 0x50e   :  { %1093 = vmatmul.f32.gmra.mxu2 %v965_v19 }
 0x511   :  { %v932_v47 = vpop.f32.mrf.mxu1  ;;  %v1046_v29 = vpop.f32.mrf.mxu2 }
 0x512   :  { %v933_v60 = vadd.f32 %v932_v47, %v820_v36  ;;  %v1047_v56 = vadd.f32 %v1812_v42, %v1046_v29 }
 0x514   :  { %v966_v9 = vmax.f32 %v933_v60, 0.0  ;;  %1114 = vst [vmem:[#allocation10 + $0x70] sm:$0xff] %v1047_v56 }
 0x516   :  { %1096 = vmatmul.f32.gmra.mxu2 %v966_v9 }
 0x519   :  { %v1049_v8 = vpop.f32.mrf.mxu2 }
 0x51a   :  { %v1050_v17 = vadd.f32 %v1812_v42, %v1049_v8 }
 0x51c   :  { %1115 = vst [vmem:[#allocation10 + $0x78] sm:$0xff] %v1050_v17 }
 0x521   :  { %v1052_v20 = vpop.f32.mrf.mxu2 }
 0x522   :  { %v1053_v23 = vadd.f32 %v1812_v42, %v1052_v20 }
 0x524   :  { %1116 = vst [vmem:[#allocation10 + $0x80] sm:$0xff] %v1053_v23 }
 0x529   :  { %v1055_v25 = vpop.f32.mrf.mxu2 }
 0x52a   :  { %v1056_v28 = vadd.f32 %v1812_v42, %v1055_v25 }
 0x52c   :  { %1117 = vst [vmem:[#allocation10 + $0x88] sm:$0xff] %v1056_v28 }
 0x531   :  { %v1058_v10 = vpop.f32.mrf.mxu2 }
 0x532   :  { %v1059_v31 = vadd.f32 %v1812_v42, %v1058_v10 }
 0x534   :  { %1118 = vst [vmem:[#allocation10 + $0x90] sm:$0xff] %v1059_v31 }
 0x539   :  { %v1061_v45 = vpop.f32.mrf.mxu2 }
 0x53a   :  { %v1062_v34 = vadd.f32 %v1812_v42, %v1061_v45 }
 0x53c   :  { %1119 = vst [vmem:[#allocation10 + $0x98] sm:$0xff] %v1062_v34 }
 0x541   :  { %v1064_v37 = vpop.f32.mrf.mxu2 }
 0x542   :  { %v1065_v40 = vadd.f32 %v1812_v42, %v1064_v37 }
 0x544   :  { %1120 = vst [vmem:[#allocation10 + $0xa0] sm:$0xff] %v1065_v40 }
 0x549   :  { %v1067_v43 = vpop.f32.mrf.mxu2 }
 0x54a   :  { %v1068_v46 = vadd.f32 %v1812_v42, %v1067_v43 }
 0x54c   :  { %1121 = vst [vmem:[#allocation10 + $0xa8] sm:$0xff] %v1068_v46 }
 0x551   :  { %v1070_v49 = vpop.f32.mrf.mxu2 }
 0x552   :  { %v1071_v52 = vadd.f32 %v1812_v42, %v1070_v49 }
 0x554   :  { %1122 = vst [vmem:[#allocation10 + $0xb0] sm:$0xff] %v1071_v52 }
 0x559   :  { %v1073_v57 = vpop.f32.mrf.mxu2 }
 0x55a   :  { %v1074_v63 = vadd.f32 %v1812_v42, %v1073_v57 }
 0x55c   :  { %1123 = vst [vmem:[#allocation10 + $0xb8] sm:$0xff] %v1074_v63 }
 0x561   :  { %v1076_v27 = vpop.f32.mrf.mxu2 }
 0x562   :  { %v1077_v30 = vadd.f32 %v1812_v42, %v1076_v27 }
 0x564   :  { %1124 = vst [vmem:[#allocation10 + $0xc0] sm:$0xff] %v1077_v30 }
 0x569   :  { %v1079_v5 = vpop.f32.mrf.mxu2 }
 0x56a   :  { %v1080_v12 = vadd.f32 %v1812_v42, %v1079_v5 }
 0x56c   :  { %1125 = vst [vmem:[#allocation10 + $0xc8] sm:$0xff] %v1080_v12 }
 0x571   :  { %v1082_v32 = vpop.f32.mrf.mxu2 }
 0x572   :  { %v1083_v22 = vadd.f32 %v1812_v42, %v1082_v32 }
 0x574   :  { %1126 = vst [vmem:[#allocation10 + $0xd0] sm:$0xff] %v1083_v22 }
 0x579   :  { %v1085_v35 = vpop.f32.mrf.mxu2 }
 0x57a   :  { %v1086_v55 = vadd.f32 %v1812_v42, %v1085_v35 }
 0x57c   :  { %1127 = vst [vmem:[#allocation10 + $0xd8] sm:$0xff] %v1086_v55 }
 0x581   :  { %v1088_v38 = vpop.f32.mrf.mxu2 }
 0x582   :  { %v1089_v2 = vadd.f32 %v1812_v42, %v1088_v38 }
 0x584   :  { %1128 = vst [vmem:[#allocation10 + $0xe0] sm:$0xff] %v1089_v2 }
 0x589   :  { %v1091_v53 = vpop.f32.mrf.mxu2 }
 0x58a   :  { %v1092_v3 = vadd.f32 %v1812_v42, %v1091_v53 }
 0x58c   :  { %1129 = vst [vmem:[#allocation10 + $0xe8] sm:$0xff] %v1092_v3 }
 0x591   :  { %v1094_v13 = vpop.f32.mrf.mxu2 }
 0x592   :  { %v1095_v33 = vadd.f32 %v1812_v42, %v1094_v13 }
 0x594   :  { %1130 = vst [vmem:[#allocation10 + $0xf0] sm:$0xff] %v1095_v33 }
 0x599   :  { %v1097_v44 = vpop.f32.mrf.mxu2 }
 0x59a   :  { %v1098_v62 = vadd.f32 %v1812_v42, %v1097_v44 }
 0x59c   :  { %1131 = vst [vmem:[#allocation10 + $0xf8] sm:$0xff] %v1098_v62 }
 0x59d   :  { %1144 = dma.vmem_to_hbm [thread:$0]  %s1137_s22, 4096, %s1139_s25, [#allocation4], %s1356_s9, %s1356_s9, %s1357_s10  }
 0x59e   :  { %1350 = dma.done.wait [#allocation4], 4096  }
 0x59f   :  { %1351 = vsyncadd [#allocation4], 4294963200 }
 0x5a0   :  { %1149 = vsyncpa [#allocation3], 1 }
 0x5a1   :  { %1150 = vsyncpa [#allocation6], 1 }
 0x5a2   :  { %1151 = vsyncpa [#allocation9], 1 }
 0x5a3   :  { %1152 = vsyncpa [#allocation4], 1 }

</bundles_post_ra>
